<compile_context>
chip_gen: v7x
topology: tpu7x:2x2x1
jax: 0.10.0
libtpu: 0.0.40
codegen_flags: <defaults>
</compile_context>

<pallas_src>
import jax
import jax.numpy as jnp
from jax.experimental import pallas as pl
from jax.experimental.pallas import tpu as pltpu

# ----------------------------- model config (small, synthetic) ---------------
VOCAB = 64
MAX_POS = 16
B = 2          # batch
S = 8          # sequence length
H = 32         # hidden size
NH = 2         # attention heads
DH = H // NH   # head dim
FF = 64        # intermediate (FFN) size
L = 2          # number of transformer layers
LN_EPS = 1e-12


# ----------------------------- in-kernel math helpers -------------------------
def _layernorm(x, g, b):
    # Two-pass form kept on purpose (numerically safer than E[x^2]-E[x]^2).
    mu = jnp.mean(x, axis=-1, keepdims=True)
    var = jnp.mean((x - mu) ** 2, axis=-1, keepdims=True)
    return (x - mu) * jax.lax.rsqrt(var + LN_EPS) * g + b


def _softmax(x):
    m = jnp.max(x, axis=-1, keepdims=True)
    e = jnp.exp(x - m)
    # approx=True -> EUP vrcp slot (otherwise idle in this kernel)
    return e * pl.reciprocal(jnp.sum(e, axis=-1, keepdims=True), approx=True)


def _gelu(x):
    # TODO(synk): HF BERT uses exact erf-based GELU; tanh approximation used
    # here for a Mosaic-safe transcendental path (EUP tanh).
    c = 0.7978845608028654  # sqrt(2/pi)
    return 0.5 * x * (1.0 + jnp.tanh(c * (x + 0.044715 * x * x * x)))


def _matmul(a, b):
    return jnp.dot(a, b, preferred_element_type=jnp.float32)


# ----------------------------- the Pallas kernel -------------------------------
def bert_pooler_kernel(
    emb_ref,        # [B*S, H]    word+pos+type embeddings (pre-LayerNorm)
    mask_ref,       # [B, 1, S]   additive attention mask (0 or -1e9)
    wqkv_ref,       # [L, H, 3H]  fused Q|K|V weights (Q pre-scaled by 1/sqrt(DH))
    bqkv_ref,       # [L, 1, 3H]  fused Q|K|V biases  (Q bias pre-scaled)
    wo_ref,         # [L, H, H]   attention output projection
    bo_ref,         # [L, 1, H]
    ln1g_ref, ln1b_ref,   # [L, 1, H]
    w1_ref, b1_ref,       # [L, H, FF], [L, 1, FF]
    w2_ref, b2_ref,       # [L, FF, H], [L, 1, H]
    ln2g_ref, ln2b_ref,   # [L, 1, H]
    embg_ref, embb_ref,   # [1, H]
    poolw_ref, poolb_ref,  # [H, H], [1, H]
    out_ref,        # [B, H]      pooler_output
):
    # --- hoisted once: additive mask for the fused (head*batch) score shape.
    mask_bss = jnp.broadcast_to(mask_ref[...], (B, S, S))          # [B, S, S]
    mask_hb = jnp.concatenate([mask_bss] * NH, axis=0)             # [NH*B, S, S]

    # Embedding LayerNorm on the whole (batch-fused) activation.
    h = _layernorm(emb_ref[...], embg_ref[...], embb_ref[...])     # [B*S, H]

    for l in range(L):                       # static unroll over layers (L=2)
        # --- self attention -------------------------------------------------
        # Fused QKV projection for the whole batch: one matmul per layer.
        # (1/sqrt(DH) already folded into the Q columns.)
        qkv = _matmul(h, wqkv_ref[l]) + bqkv_ref[l]                # [B*S, 3H]

        # Head-major batched q/k/v: index n*B + b along the leading dim.
        qh = jnp.concatenate(
            [qkv[:, n * DH:(n + 1) * DH].reshape(B, S, DH) for n in range(NH)],
            axis=0)                                                 # [NH*B, S, DH]
        kh = jnp.concatenate(
            [qkv[:, H + n * DH:H + (n + 1) * DH].reshape(B, S, DH) for n in range(NH)],
            axis=0)                                                 # [NH*B, S, DH]
        vh = jnp.concatenate(
            [qkv[:, 2 * H + n * DH:2 * H + (n + 1) * DH].reshape(B, S, DH)
             for n in range(NH)],
            axis=0)                                                 # [NH*B, S, DH]

        # scores = Q @ K^T for ALL heads/batches in one batched contraction.
        scores = jax.lax.dot_general(
            qh, kh, (((2,), (2,)), ((0,), (0,))),
            preferred_element_type=jnp.float32)                     # [NH*B, S, S]
        probs = _softmax(scores + mask_hb)                          # one softmax / layer

        ctx = jax.lax.dot_general(
            probs, vh, (((2,), (1,)), ((0,), (0,))),
            preferred_element_type=jnp.float32)                     # [NH*B, S, DH]

        # Repack heads back onto lanes -> [B*S, H], then ONE output projection
        # with K=H (instead of NH pushes with K=DH).
        ctx_full = jnp.concatenate(
            [ctx[n * B:(n + 1) * B].reshape(B * S, DH) for n in range(NH)],
            axis=-1)                                                # [B*S, H]
        attn = _matmul(ctx_full, wo_ref[l]) + bo_ref[l]             # [B*S, H]

        h = _layernorm(h + attn, ln1g_ref[l], ln1b_ref[l])          # [B*S, H]

        if l == L - 1:
            # Only token 0 feeds the pooler: drop all other rows before the
            # final FFN / LN2 (they are token-wise ops).
            h = h.reshape(B, S, H)[:, 0, :]                         # [B, H]

        # --- feed forward ----------------------------------------------------
        ff = _gelu(_matmul(h, w1_ref[l]) + b1_ref[l])
        ff = _matmul(ff, w2_ref[l]) + b2_ref[l]
        h = _layernorm(h + ff, ln2g_ref[l], ln2b_ref[l])

    # --- pooler: tanh(dense(CLS token)), whole batch, single store ----------
    out_ref[...] = jnp.tanh(_matmul(h, poolw_ref[...]) + poolb_ref[...])


# ----------------------------- params ----------------------------------------
def make_params(key):
    ks = jax.random.split(key, 16)
    s = 0.02
    return dict(
        word_emb=s * jax.random.normal(ks[0], (VOCAB, H), jnp.float32),
        pos_emb=s * jax.random.normal(ks[1], (MAX_POS, H), jnp.float32),
        type_emb=s * jax.random.normal(ks[2], (2, H), jnp.float32),
        emb_ln_g=jnp.ones((1, H), jnp.float32),
        emb_ln_b=jnp.zeros((1, H), jnp.float32),
        wq=s * jax.random.normal(ks[3], (L, H, H), jnp.float32),
        bq=jnp.zeros((L, 1, H), jnp.float32),
        wk=s * jax.random.normal(ks[4], (L, H, H), jnp.float32),
        bk=jnp.zeros((L, 1, H), jnp.float32),
        wv=s * jax.random.normal(ks[5], (L, H, H), jnp.float32),
        bv=jnp.zeros((L, 1, H), jnp.float32),
        wo=s * jax.random.normal(ks[6], (L, H, H), jnp.float32),
        bo=jnp.zeros((L, 1, H), jnp.float32),
        ln1_g=jnp.ones((L, 1, H), jnp.float32),
        ln1_b=jnp.zeros((L, 1, H), jnp.float32),
        w1=s * jax.random.normal(ks[7], (L, H, FF), jnp.float32),
        b1=jnp.zeros((L, 1, FF), jnp.float32),
        w2=s * jax.random.normal(ks[8], (L, FF, H), jnp.float32),
        b2=jnp.zeros((L, 1, H), jnp.float32),
        ln2_g=jnp.ones((L, 1, H), jnp.float32),
        ln2_b=jnp.zeros((L, 1, H), jnp.float32),
        pool_w=s * jax.random.normal(ks[9], (H, H), jnp.float32),
        pool_b=jnp.zeros((1, H), jnp.float32),
    )


def prepare_params(params):
    """One-time weight packing, OUTSIDE the per-call forward (weights frozen)."""
    inv_sqrt_dh = 1.0 / (DH ** 0.5)
    return dict(
        word_emb=params["word_emb"],
        pos_emb=params["pos_emb"],
        type_emb=params["type_emb"],
        emb_ln_g=params["emb_ln_g"],
        emb_ln_b=params["emb_ln_b"],
        # Fused Q|K|V projection, with 1/sqrt(DH) folded into the Q columns.
        wqkv=jnp.concatenate(
            [params["wq"] * inv_sqrt_dh, params["wk"], params["wv"]], axis=-1),
        bqkv=jnp.concatenate(
            [params["bq"] * inv_sqrt_dh, params["bk"], params["bv"]], axis=-1),
        wo=params["wo"], bo=params["bo"],
        ln1_g=params["ln1_g"], ln1_b=params["ln1_b"],
        w1=params["w1"], b1=params["b1"],
        w2=params["w2"], b2=params["b2"],
        ln2_g=params["ln2_g"], ln2_b=params["ln2_b"],
        pool_w=params["pool_w"], pool_b=params["pool_b"],
    )


# ----------------------------- per-call forward (glue + pallas_call) ----------
@jax.jit
def bert_classifier_pretrained_forward(input_ids, attention_mask, prep):
    """Returns pooler_output, shape [B, H] float32."""
    # Embedding gather (glue). token_type_ids assumed all-zero (segment 0).
    pos_ids = jnp.arange(S, dtype=jnp.int32)
    emb = (
        prep["word_emb"][input_ids]
        + prep["pos_emb"][pos_ids][None, :, :]
        + prep["type_emb"][0][None, None, :]
    ).astype(jnp.float32)                                          # [B, S, H]
    emb = emb.reshape(B * S, H)                                    # batch-fused
    # Additive attention mask, HF-style (broadcast to scores inside the kernel).
    mask_add = (1.0 - attention_mask.astype(jnp.float32))[:, None, :] * -1e9  # [B,1,S]

    vmem = pl.BlockSpec(memory_space=pltpu.MemorySpace.VMEM)
    kernel_inputs = (
        emb, mask_add,
        prep["wqkv"], prep["bqkv"], prep["wo"], prep["bo"],
        prep["ln1_g"], prep["ln1_b"],
        prep["w1"], prep["b1"], prep["w2"], prep["b2"],
        prep["ln2_g"], prep["ln2_b"],
        prep["emb_ln_g"], prep["emb_ln_b"],
        prep["pool_w"], prep["pool_b"],
    )
    return pl.pallas_call(
        bert_pooler_kernel,
        out_shape=jax.ShapeDtypeStruct((B, H), jnp.float32),
        in_specs=[vmem] * len(kernel_inputs),
        out_specs=vmem,
    )(*kernel_inputs)


if __name__ == "__main__":
    key = jax.random.PRNGKey(0)
    pkey, ikey = jax.random.split(key)
    params = make_params(pkey)
    prep = prepare_params(params)   # one-time packing, outside the per-call path

    input_ids = jax.random.randint(ikey, (B, S), 0, VOCAB, dtype=jnp.int32)
    attention_mask = jnp.array(
        [[1, 1, 1, 1, 1, 1, 1, 1],
         [1, 1, 1, 1, 1, 1, 0, 0]], dtype=jnp.int32)

    pooled = bert_classifier_pretrained_forward(input_ids, attention_mask, prep)
    pooled = jax.block_until_ready(pooled)
    assert pooled.shape == (B, H) and pooled.dtype == jnp.float32
    assert bool(jnp.all(jnp.isfinite(pooled)))
    print("KERNEL_OK")
</pallas_src>

<mosaic_0001>
module attributes {stable_mosaic.version = 11 : i64} {
  func.func @bert_pooler_kernel(%arg0: memref<16x32xf32, #tpu.memory_space<vmem>>, %arg1: memref<2x1x8xf32, #tpu.memory_space<vmem>>, %arg2: memref<2x32x96xf32, #tpu.memory_space<vmem>>, %arg3: memref<2x1x96xf32, #tpu.memory_space<vmem>>, %arg4: memref<2x32x32xf32, #tpu.memory_space<vmem>>, %arg5: memref<2x1x32xf32, #tpu.memory_space<vmem>>, %arg6: memref<2x1x32xf32, #tpu.memory_space<vmem>>, %arg7: memref<2x1x32xf32, #tpu.memory_space<vmem>>, %arg8: memref<2x32x64xf32, #tpu.memory_space<vmem>>, %arg9: memref<2x1x64xf32, #tpu.memory_space<vmem>>, %arg10: memref<2x64x32xf32, #tpu.memory_space<vmem>>, %arg11: memref<2x1x32xf32, #tpu.memory_space<vmem>>, %arg12: memref<2x1x32xf32, #tpu.memory_space<vmem>>, %arg13: memref<2x1x32xf32, #tpu.memory_space<vmem>>, %arg14: memref<1x32xf32, #tpu.memory_space<vmem>>, %arg15: memref<1x32xf32, #tpu.memory_space<vmem>>, %arg16: memref<32x32xf32, #tpu.memory_space<vmem>>, %arg17: memref<1x32xf32, #tpu.memory_space<vmem>>, %arg18: memref<2x32xf32, #tpu.memory_space<vmem>>) attributes {dimension_semantics = [], scalar_prefetch = 0 : i64, scratch_operands = 0 : i64, tpu.core_type = #tpu.core_type<tc>} {
    %c0 = arith.constant 0 : index
    %c0_0 = arith.constant 0 : index
    %c0_1 = arith.constant 0 : index
    %0 = vector.load %arg1[%c0, %c0_0, %c0_1] : memref<2x1x8xf32, #tpu.memory_space<vmem>>, vector<2x1x8xf32>
    %1 = vector.shape_cast %0 : vector<2x1x8xf32> to vector<2x1x8xf32>
    %2 = vector.broadcast %1 : vector<2x1x8xf32> to vector<2x8x8xf32>
    %3 = tpu.concatenate %2, %2 in 0 : vector<2x8x8xf32>, vector<2x8x8xf32> -> vector<4x8x8xf32>
    %c0_2 = arith.constant 0 : index
    %c0_3 = arith.constant 0 : index
    %4 = vector.load %arg0[%c0_2, %c0_3] : memref<16x32xf32, #tpu.memory_space<vmem>>, vector<16x32xf32>
    %c0_4 = arith.constant 0 : index
    %c0_5 = arith.constant 0 : index
    %5 = vector.load %arg14[%c0_4, %c0_5] : memref<1x32xf32, #tpu.memory_space<vmem>>, vector<1x32xf32>
    %c0_6 = arith.constant 0 : index
    %c0_7 = arith.constant 0 : index
    %6 = vector.load %arg15[%c0_6, %c0_7] : memref<1x32xf32, #tpu.memory_space<vmem>>, vector<1x32xf32>
    %cst = arith.constant dense<0.000000e+00> : vector<16xf32>
    %7 = vector.multi_reduction <add>, %4, %cst [1] : vector<16x32xf32> to vector<16xf32>
    %8 = vector.shape_cast %7 : vector<16xf32> to vector<16x1xf32>
    %cst_8 = arith.constant 3.200000e+01 : f32
    %9 = vector.broadcast %cst_8 : f32 to vector<16x1xf32>
    %10 = arith.divf %8, %9 : vector<16x1xf32>
    %11 = vector.broadcast %10 : vector<16x1xf32> to vector<16x32xf32>
    %12 = arith.subf %4, %11 : vector<16x32xf32>
    %13 = arith.mulf %12, %12 : vector<16x32xf32>
    %cst_9 = arith.constant dense<0.000000e+00> : vector<16xf32>
    %14 = vector.multi_reduction <add>, %13, %cst_9 [1] : vector<16x32xf32> to vector<16xf32>
    %15 = vector.shape_cast %14 : vector<16xf32> to vector<16x1xf32>
    %cst_10 = arith.constant 3.200000e+01 : f32
    %16 = vector.broadcast %cst_10 : f32 to vector<16x1xf32>
    %17 = arith.divf %15, %16 : vector<16x1xf32>
    %18 = vector.broadcast %10 : vector<16x1xf32> to vector<16x32xf32>
    %19 = arith.subf %4, %18 : vector<16x32xf32>
    %cst_11 = arith.constant 9.99999996E-13 : f32
    %20 = vector.broadcast %cst_11 : f32 to vector<16x1xf32>
    %21 = arith.addf %17, %20 : vector<16x1xf32>
    %22 = math.rsqrt %21 : vector<16x1xf32>
    %23 = vector.broadcast %22 : vector<16x1xf32> to vector<16x32xf32>
    %24 = arith.mulf %19, %23 : vector<16x32xf32>
    %25 = vector.broadcast %5 : vector<1x32xf32> to vector<16x32xf32>
    %26 = arith.mulf %24, %25 : vector<16x32xf32>
    %27 = vector.broadcast %6 : vector<1x32xf32> to vector<16x32xf32>
    %28 = arith.addf %26, %27 : vector<16x32xf32>
    %c0_12 = arith.constant 0 : index
    %c0_13 = arith.constant 0 : index
    %c0_14 = arith.constant 0 : index
    %29 = vector.load %arg2[%c0_12, %c0_13, %c0_14] : memref<2x32x96xf32, #tpu.memory_space<vmem>>, vector<1x32x96xf32>
    %30 = vector.shape_cast %29 : vector<1x32x96xf32> to vector<32x96xf32>
    %cst_15 = arith.constant dense<0.000000e+00> : vector<16x96xf32>
    %31 = tpu.matmul %28, %30, %cst_15 {dimension_numbers = #tpu.dot_dimension_numbers<[1], [0], [0], [1], [0, 0, 1, 1], [], []>} : vector<16x32xf32>, vector<32x96xf32>, vector<16x96xf32> -> vector<16x96xf32>
    %c0_16 = arith.constant 0 : index
    %c0_17 = arith.constant 0 : index
    %c0_18 = arith.constant 0 : index
    %32 = vector.load %arg3[%c0_16, %c0_17, %c0_18] : memref<2x1x96xf32, #tpu.memory_space<vmem>>, vector<1x1x96xf32>
    %33 = vector.shape_cast %32 : vector<1x1x96xf32> to vector<1x96xf32>
    %34 = vector.broadcast %33 : vector<1x96xf32> to vector<16x96xf32>
    %35 = arith.addf %31, %34 : vector<16x96xf32>
    %36 = vector.extract_strided_slice %35 {offsets = [0, 0], sizes = [16, 16], strides = [1, 1]} : vector<16x96xf32> to vector<16x16xf32>
    %37 = vector.shape_cast %36 : vector<16x16xf32> to vector<2x8x16xf32>
    %38 = vector.extract_strided_slice %35 {offsets = [0, 16], sizes = [16, 16], strides = [1, 1]} : vector<16x96xf32> to vector<16x16xf32>
    %39 = vector.shape_cast %38 : vector<16x16xf32> to vector<2x8x16xf32>
    %40 = tpu.concatenate %37, %39 in 0 : vector<2x8x16xf32>, vector<2x8x16xf32> -> vector<4x8x16xf32>
    %41 = vector.extract_strided_slice %35 {offsets = [0, 32], sizes = [16, 16], strides = [1, 1]} : vector<16x96xf32> to vector<16x16xf32>
    %42 = vector.shape_cast %41 : vector<16x16xf32> to vector<2x8x16xf32>
    %43 = vector.extract_strided_slice %35 {offsets = [0, 48], sizes = [16, 16], strides = [1, 1]} : vector<16x96xf32> to vector<16x16xf32>
    %44 = vector.shape_cast %43 : vector<16x16xf32> to vector<2x8x16xf32>
    %45 = tpu.concatenate %42, %44 in 0 : vector<2x8x16xf32>, vector<2x8x16xf32> -> vector<4x8x16xf32>
    %46 = vector.extract_strided_slice %35 {offsets = [0, 64], sizes = [16, 16], strides = [1, 1]} : vector<16x96xf32> to vector<16x16xf32>
    %47 = vector.shape_cast %46 : vector<16x16xf32> to vector<2x8x16xf32>
    %48 = vector.extract_strided_slice %35 {offsets = [0, 80], sizes = [16, 16], strides = [1, 1]} : vector<16x96xf32> to vector<16x16xf32>
    %49 = vector.shape_cast %48 : vector<16x16xf32> to vector<2x8x16xf32>
    %50 = tpu.concatenate %47, %49 in 0 : vector<2x8x16xf32>, vector<2x8x16xf32> -> vector<4x8x16xf32>
    %cst_19 = arith.constant dense<0.000000e+00> : vector<4x8x8xf32>
    %51 = tpu.matmul %40, %45, %cst_19 {dimension_numbers = #tpu.dot_dimension_numbers<[2], [2], [1], [1], [0, 0, 0, 1, 1, 1], [0], [0]>} : vector<4x8x16xf32>, vector<4x8x16xf32>, vector<4x8x8xf32> -> vector<4x8x8xf32>
    %52 = arith.addf %51, %3 : vector<4x8x8xf32>
    %cst_20 = arith.constant dense<0xFF800000> : vector<4x8xf32>
    %53 = vector.multi_reduction <maximumf>, %52, %cst_20 [2] : vector<4x8x8xf32> to vector<4x8xf32>
    %54 = vector.shape_cast %53 : vector<4x8xf32> to vector<4x8x1xf32>
    %55 = vector.broadcast %54 : vector<4x8x1xf32> to vector<4x8x8xf32>
    %56 = arith.subf %52, %55 : vector<4x8x8xf32>
    %57 = math.exp %56 : vector<4x8x8xf32>
    %cst_21 = arith.constant dense<0.000000e+00> : vector<4x8xf32>
    %58 = vector.multi_reduction <add>, %57, %cst_21 [2] : vector<4x8x8xf32> to vector<4x8xf32>
    %59 = vector.shape_cast %58 : vector<4x8xf32> to vector<4x8x1xf32>
    %60 = tpu.reciprocal %59 {approx = true} : vector<4x8x1xf32> -> vector<4x8x1xf32>
    %61 = vector.broadcast %60 : vector<4x8x1xf32> to vector<4x8x8xf32>
    %62 = arith.mulf %57, %61 : vector<4x8x8xf32>
    %cst_22 = arith.constant dense<0.000000e+00> : vector<4x8x16xf32>
    %63 = tpu.matmul %62, %50, %cst_22 {dimension_numbers = #tpu.dot_dimension_numbers<[2], [1], [1], [2], [0, 0, 0, 1, 1, 2], [0], [0]>} : vector<4x8x8xf32>, vector<4x8x16xf32>, vector<4x8x16xf32> -> vector<4x8x16xf32>
    %64 = vector.extract_strided_slice %63 {offsets = [0, 0, 0], sizes = [2, 8, 16], strides = [1, 1, 1]} : vector<4x8x16xf32> to vector<2x8x16xf32>
    %65 = vector.shape_cast %64 : vector<2x8x16xf32> to vector<16x16xf32>
    %66 = vector.extract_strided_slice %63 {offsets = [2, 0, 0], sizes = [2, 8, 16], strides = [1, 1, 1]} : vector<4x8x16xf32> to vector<2x8x16xf32>
    %67 = vector.shape_cast %66 : vector<2x8x16xf32> to vector<16x16xf32>
    %68 = tpu.concatenate %65, %67 in 1 : vector<16x16xf32>, vector<16x16xf32> -> vector<16x32xf32>
    %c0_23 = arith.constant 0 : index
    %c0_24 = arith.constant 0 : index
    %c0_25 = arith.constant 0 : index
    %69 = vector.load %arg4[%c0_23, %c0_24, %c0_25] : memref<2x32x32xf32, #tpu.memory_space<vmem>>, vector<1x32x32xf32>
    %70 = vector.shape_cast %69 : vector<1x32x32xf32> to vector<32x32xf32>
    %cst_26 = arith.constant dense<0.000000e+00> : vector<16x32xf32>
    %71 = tpu.matmul %68, %70, %cst_26 {dimension_numbers = #tpu.dot_dimension_numbers<[1], [0], [0], [1], [0, 0, 1, 1], [], []>} : vector<16x32xf32>, vector<32x32xf32>, vector<16x32xf32> -> vector<16x32xf32>
    %c0_27 = arith.constant 0 : index
    %c0_28 = arith.constant 0 : index
    %c0_29 = arith.constant 0 : index
    %72 = vector.load %arg5[%c0_27, %c0_28, %c0_29] : memref<2x1x32xf32, #tpu.memory_space<vmem>>, vector<1x1x32xf32>
    %73 = vector.shape_cast %72 : vector<1x1x32xf32> to vector<1x32xf32>
    %74 = vector.broadcast %73 : vector<1x32xf32> to vector<16x32xf32>
    %75 = arith.addf %71, %74 : vector<16x32xf32>
    %76 = arith.addf %28, %75 : vector<16x32xf32>
    %c0_30 = arith.constant 0 : index
    %c0_31 = arith.constant 0 : index
    %c0_32 = arith.constant 0 : index
    %77 = vector.load %arg6[%c0_30, %c0_31, %c0_32] : memref<2x1x32xf32, #tpu.memory_space<vmem>>, vector<1x1x32xf32>
    %78 = vector.shape_cast %77 : vector<1x1x32xf32> to vector<1x32xf32>
    %c0_33 = arith.constant 0 : index
    %c0_34 = arith.constant 0 : index
    %c0_35 = arith.constant 0 : index
    %79 = vector.load %arg7[%c0_33, %c0_34, %c0_35] : memref<2x1x32xf32, #tpu.memory_space<vmem>>, vector<1x1x32xf32>
    %80 = vector.shape_cast %79 : vector<1x1x32xf32> to vector<1x32xf32>
    %cst_36 = arith.constant dense<0.000000e+00> : vector<16xf32>
    %81 = vector.multi_reduction <add>, %76, %cst_36 [1] : vector<16x32xf32> to vector<16xf32>
    %82 = vector.shape_cast %81 : vector<16xf32> to vector<16x1xf32>
    %cst_37 = arith.constant 3.200000e+01 : f32
    %83 = vector.broadcast %cst_37 : f32 to vector<16x1xf32>
    %84 = arith.divf %82, %83 : vector<16x1xf32>
    %85 = vector.broadcast %84 : vector<16x1xf32> to vector<16x32xf32>
    %86 = arith.subf %76, %85 : vector<16x32xf32>
    %87 = arith.mulf %86, %86 : vector<16x32xf32>
    %cst_38 = arith.constant dense<0.000000e+00> : vector<16xf32>
    %88 = vector.multi_reduction <add>, %87, %cst_38 [1] : vector<16x32xf32> to vector<16xf32>
    %89 = vector.shape_cast %88 : vector<16xf32> to vector<16x1xf32>
    %cst_39 = arith.constant 3.200000e+01 : f32
    %90 = vector.broadcast %cst_39 : f32 to vector<16x1xf32>
    %91 = arith.divf %89, %90 : vector<16x1xf32>
    %92 = vector.broadcast %84 : vector<16x1xf32> to vector<16x32xf32>
    %93 = arith.subf %76, %92 : vector<16x32xf32>
    %cst_40 = arith.constant 9.99999996E-13 : f32
    %94 = vector.broadcast %cst_40 : f32 to vector<16x1xf32>
    %95 = arith.addf %91, %94 : vector<16x1xf32>
    %96 = math.rsqrt %95 : vector<16x1xf32>
    %97 = vector.broadcast %96 : vector<16x1xf32> to vector<16x32xf32>
    %98 = arith.mulf %93, %97 : vector<16x32xf32>
    %99 = vector.broadcast %78 : vector<1x32xf32> to vector<16x32xf32>
    %100 = arith.mulf %98, %99 : vector<16x32xf32>
    %101 = vector.broadcast %80 : vector<1x32xf32> to vector<16x32xf32>
    %102 = arith.addf %100, %101 : vector<16x32xf32>
    %c0_41 = arith.constant 0 : index
    %c0_42 = arith.constant 0 : index
    %c0_43 = arith.constant 0 : index
    %103 = vector.load %arg8[%c0_41, %c0_42, %c0_43] : memref<2x32x64xf32, #tpu.memory_space<vmem>>, vector<1x32x64xf32>
    %104 = vector.shape_cast %103 : vector<1x32x64xf32> to vector<32x64xf32>
    %cst_44 = arith.constant dense<0.000000e+00> : vector<16x64xf32>
    %105 = tpu.matmul %102, %104, %cst_44 {dimension_numbers = #tpu.dot_dimension_numbers<[1], [0], [0], [1], [0, 0, 1, 1], [], []>} : vector<16x32xf32>, vector<32x64xf32>, vector<16x64xf32> -> vector<16x64xf32>
    %c0_45 = arith.constant 0 : index
    %c0_46 = arith.constant 0 : index
    %c0_47 = arith.constant 0 : index
    %106 = vector.load %arg9[%c0_45, %c0_46, %c0_47] : memref<2x1x64xf32, #tpu.memory_space<vmem>>, vector<1x1x64xf32>
    %107 = vector.shape_cast %106 : vector<1x1x64xf32> to vector<1x64xf32>
    %108 = vector.broadcast %107 : vector<1x64xf32> to vector<16x64xf32>
    %109 = arith.addf %105, %108 : vector<16x64xf32>
    %cst_48 = arith.constant 5.000000e-01 : f32
    %110 = vector.broadcast %cst_48 : f32 to vector<16x64xf32>
    %111 = arith.mulf %110, %109 : vector<16x64xf32>
    %cst_49 = arith.constant 4.471500e-02 : f32
    %112 = vector.broadcast %cst_49 : f32 to vector<16x64xf32>
    %113 = arith.mulf %112, %109 : vector<16x64xf32>
    %114 = arith.mulf %113, %109 : vector<16x64xf32>
    %115 = arith.mulf %114, %109 : vector<16x64xf32>
    %116 = arith.addf %109, %115 : vector<16x64xf32>
    %cst_50 = arith.constant 0.797884583 : f32
    %117 = vector.broadcast %cst_50 : f32 to vector<16x64xf32>
    %118 = arith.mulf %117, %116 : vector<16x64xf32>
    %119 = math.tanh %118 : vector<16x64xf32>
    %cst_51 = arith.constant 1.000000e+00 : f32
    %120 = vector.broadcast %cst_51 : f32 to vector<16x64xf32>
    %121 = arith.addf %120, %119 : vector<16x64xf32>
    %122 = arith.mulf %111, %121 : vector<16x64xf32>
    %c0_52 = arith.constant 0 : index
    %c0_53 = arith.constant 0 : index
    %c0_54 = arith.constant 0 : index
    %123 = vector.load %arg10[%c0_52, %c0_53, %c0_54] : memref<2x64x32xf32, #tpu.memory_space<vmem>>, vector<1x64x32xf32>
    %124 = vector.shape_cast %123 : vector<1x64x32xf32> to vector<64x32xf32>
    %cst_55 = arith.constant dense<0.000000e+00> : vector<16x32xf32>
    %125 = tpu.matmul %122, %124, %cst_55 {dimension_numbers = #tpu.dot_dimension_numbers<[1], [0], [0], [1], [0, 0, 1, 1], [], []>} : vector<16x64xf32>, vector<64x32xf32>, vector<16x32xf32> -> vector<16x32xf32>
    %c0_56 = arith.constant 0 : index
    %c0_57 = arith.constant 0 : index
    %c0_58 = arith.constant 0 : index
    %126 = vector.load %arg11[%c0_56, %c0_57, %c0_58] : memref<2x1x32xf32, #tpu.memory_space<vmem>>, vector<1x1x32xf32>
    %127 = vector.shape_cast %126 : vector<1x1x32xf32> to vector<1x32xf32>
    %128 = vector.broadcast %127 : vector<1x32xf32> to vector<16x32xf32>
    %129 = arith.addf %125, %128 : vector<16x32xf32>
    %130 = arith.addf %102, %129 : vector<16x32xf32>
    %c0_59 = arith.constant 0 : index
    %c0_60 = arith.constant 0 : index
    %c0_61 = arith.constant 0 : index
    %131 = vector.load %arg12[%c0_59, %c0_60, %c0_61] : memref<2x1x32xf32, #tpu.memory_space<vmem>>, vector<1x1x32xf32>
    %132 = vector.shape_cast %131 : vector<1x1x32xf32> to vector<1x32xf32>
    %c0_62 = arith.constant 0 : index
    %c0_63 = arith.constant 0 : index
    %c0_64 = arith.constant 0 : index
    %133 = vector.load %arg13[%c0_62, %c0_63, %c0_64] : memref<2x1x32xf32, #tpu.memory_space<vmem>>, vector<1x1x32xf32>
    %134 = vector.shape_cast %133 : vector<1x1x32xf32> to vector<1x32xf32>
    %cst_65 = arith.constant dense<0.000000e+00> : vector<16xf32>
    %135 = vector.multi_reduction <add>, %130, %cst_65 [1] : vector<16x32xf32> to vector<16xf32>
    %136 = vector.shape_cast %135 : vector<16xf32> to vector<16x1xf32>
    %cst_66 = arith.constant 3.200000e+01 : f32
    %137 = vector.broadcast %cst_66 : f32 to vector<16x1xf32>
    %138 = arith.divf %136, %137 : vector<16x1xf32>
    %139 = vector.broadcast %138 : vector<16x1xf32> to vector<16x32xf32>
    %140 = arith.subf %130, %139 : vector<16x32xf32>
    %141 = arith.mulf %140, %140 : vector<16x32xf32>
    %cst_67 = arith.constant dense<0.000000e+00> : vector<16xf32>
    %142 = vector.multi_reduction <add>, %141, %cst_67 [1] : vector<16x32xf32> to vector<16xf32>
    %143 = vector.shape_cast %142 : vector<16xf32> to vector<16x1xf32>
    %cst_68 = arith.constant 3.200000e+01 : f32
    %144 = vector.broadcast %cst_68 : f32 to vector<16x1xf32>
    %145 = arith.divf %143, %144 : vector<16x1xf32>
    %146 = vector.broadcast %138 : vector<16x1xf32> to vector<16x32xf32>
    %147 = arith.subf %130, %146 : vector<16x32xf32>
    %cst_69 = arith.constant 9.99999996E-13 : f32
    %148 = vector.broadcast %cst_69 : f32 to vector<16x1xf32>
    %149 = arith.addf %145, %148 : vector<16x1xf32>
    %150 = math.rsqrt %149 : vector<16x1xf32>
    %151 = vector.broadcast %150 : vector<16x1xf32> to vector<16x32xf32>
    %152 = arith.mulf %147, %151 : vector<16x32xf32>
    %153 = vector.broadcast %132 : vector<1x32xf32> to vector<16x32xf32>
    %154 = arith.mulf %152, %153 : vector<16x32xf32>
    %155 = vector.broadcast %134 : vector<1x32xf32> to vector<16x32xf32>
    %156 = arith.addf %154, %155 : vector<16x32xf32>
    %c1 = arith.constant 1 : index
    %c0_70 = arith.constant 0 : index
    %c0_71 = arith.constant 0 : index
    %157 = vector.load %arg2[%c1, %c0_70, %c0_71] : memref<2x32x96xf32, #tpu.memory_space<vmem>>, vector<1x32x96xf32>
    %158 = vector.shape_cast %157 : vector<1x32x96xf32> to vector<32x96xf32>
    %cst_72 = arith.constant dense<0.000000e+00> : vector<16x96xf32>
    %159 = tpu.matmul %156, %158, %cst_72 {dimension_numbers = #tpu.dot_dimension_numbers<[1], [0], [0], [1], [0, 0, 1, 1], [], []>} : vector<16x32xf32>, vector<32x96xf32>, vector<16x96xf32> -> vector<16x96xf32>
    %c1_73 = arith.constant 1 : index
    %c0_74 = arith.constant 0 : index
    %c0_75 = arith.constant 0 : index
    %160 = vector.load %arg3[%c1_73, %c0_74, %c0_75] : memref<2x1x96xf32, #tpu.memory_space<vmem>>, vector<1x1x96xf32>
    %161 = vector.shape_cast %160 : vector<1x1x96xf32> to vector<1x96xf32>
    %162 = vector.broadcast %161 : vector<1x96xf32> to vector<16x96xf32>
    %163 = arith.addf %159, %162 : vector<16x96xf32>
    %164 = vector.extract_strided_slice %163 {offsets = [0, 0], sizes = [16, 16], strides = [1, 1]} : vector<16x96xf32> to vector<16x16xf32>
    %165 = vector.shape_cast %164 : vector<16x16xf32> to vector<2x8x16xf32>
    %166 = vector.extract_strided_slice %163 {offsets = [0, 16], sizes = [16, 16], strides = [1, 1]} : vector<16x96xf32> to vector<16x16xf32>
    %167 = vector.shape_cast %166 : vector<16x16xf32> to vector<2x8x16xf32>
    %168 = tpu.concatenate %165, %167 in 0 : vector<2x8x16xf32>, vector<2x8x16xf32> -> vector<4x8x16xf32>
    %169 = vector.extract_strided_slice %163 {offsets = [0, 32], sizes = [16, 16], strides = [1, 1]} : vector<16x96xf32> to vector<16x16xf32>
    %170 = vector.shape_cast %169 : vector<16x16xf32> to vector<2x8x16xf32>
    %171 = vector.extract_strided_slice %163 {offsets = [0, 48], sizes = [16, 16], strides = [1, 1]} : vector<16x96xf32> to vector<16x16xf32>
    %172 = vector.shape_cast %171 : vector<16x16xf32> to vector<2x8x16xf32>
    %173 = tpu.concatenate %170, %172 in 0 : vector<2x8x16xf32>, vector<2x8x16xf32> -> vector<4x8x16xf32>
    %174 = vector.extract_strided_slice %163 {offsets = [0, 64], sizes = [16, 16], strides = [1, 1]} : vector<16x96xf32> to vector<16x16xf32>
    %175 = vector.shape_cast %174 : vector<16x16xf32> to vector<2x8x16xf32>
    %176 = vector.extract_strided_slice %163 {offsets = [0, 80], sizes = [16, 16], strides = [1, 1]} : vector<16x96xf32> to vector<16x16xf32>
    %177 = vector.shape_cast %176 : vector<16x16xf32> to vector<2x8x16xf32>
    %178 = tpu.concatenate %175, %177 in 0 : vector<2x8x16xf32>, vector<2x8x16xf32> -> vector<4x8x16xf32>
    %cst_76 = arith.constant dense<0.000000e+00> : vector<4x8x8xf32>
    %179 = tpu.matmul %168, %173, %cst_76 {dimension_numbers = #tpu.dot_dimension_numbers<[2], [2], [1], [1], [0, 0, 0, 1, 1, 1], [0], [0]>} : vector<4x8x16xf32>, vector<4x8x16xf32>, vector<4x8x8xf32> -> vector<4x8x8xf32>
    %180 = arith.addf %179, %3 : vector<4x8x8xf32>
    %cst_77 = arith.constant dense<0xFF800000> : vector<4x8xf32>
    %181 = vector.multi_reduction <maximumf>, %180, %cst_77 [2] : vector<4x8x8xf32> to vector<4x8xf32>
    %182 = vector.shape_cast %181 : vector<4x8xf32> to vector<4x8x1xf32>
    %183 = vector.broadcast %182 : vector<4x8x1xf32> to vector<4x8x8xf32>
    %184 = arith.subf %180, %183 : vector<4x8x8xf32>
    %185 = math.exp %184 : vector<4x8x8xf32>
    %cst_78 = arith.constant dense<0.000000e+00> : vector<4x8xf32>
    %186 = vector.multi_reduction <add>, %185, %cst_78 [2] : vector<4x8x8xf32> to vector<4x8xf32>
    %187 = vector.shape_cast %186 : vector<4x8xf32> to vector<4x8x1xf32>
    %188 = tpu.reciprocal %187 {approx = true} : vector<4x8x1xf32> -> vector<4x8x1xf32>
    %189 = vector.broadcast %188 : vector<4x8x1xf32> to vector<4x8x8xf32>
    %190 = arith.mulf %185, %189 : vector<4x8x8xf32>
    %cst_79 = arith.constant dense<0.000000e+00> : vector<4x8x16xf32>
    %191 = tpu.matmul %190, %178, %cst_79 {dimension_numbers = #tpu.dot_dimension_numbers<[2], [1], [1], [2], [0, 0, 0, 1, 1, 2], [0], [0]>} : vector<4x8x8xf32>, vector<4x8x16xf32>, vector<4x8x16xf32> -> vector<4x8x16xf32>
    %192 = vector.extract_strided_slice %191 {offsets = [0, 0, 0], sizes = [2, 8, 16], strides = [1, 1, 1]} : vector<4x8x16xf32> to vector<2x8x16xf32>
    %193 = vector.shape_cast %192 : vector<2x8x16xf32> to vector<16x16xf32>
    %194 = vector.extract_strided_slice %191 {offsets = [2, 0, 0], sizes = [2, 8, 16], strides = [1, 1, 1]} : vector<4x8x16xf32> to vector<2x8x16xf32>
    %195 = vector.shape_cast %194 : vector<2x8x16xf32> to vector<16x16xf32>
    %196 = tpu.concatenate %193, %195 in 1 : vector<16x16xf32>, vector<16x16xf32> -> vector<16x32xf32>
    %c1_80 = arith.constant 1 : index
    %c0_81 = arith.constant 0 : index
    %c0_82 = arith.constant 0 : index
    %197 = vector.load %arg4[%c1_80, %c0_81, %c0_82] : memref<2x32x32xf32, #tpu.memory_space<vmem>>, vector<1x32x32xf32>
    %198 = vector.shape_cast %197 : vector<1x32x32xf32> to vector<32x32xf32>
    %cst_83 = arith.constant dense<0.000000e+00> : vector<16x32xf32>
    %199 = tpu.matmul %196, %198, %cst_83 {dimension_numbers = #tpu.dot_dimension_numbers<[1], [0], [0], [1], [0, 0, 1, 1], [], []>} : vector<16x32xf32>, vector<32x32xf32>, vector<16x32xf32> -> vector<16x32xf32>
    %c1_84 = arith.constant 1 : index
    %c0_85 = arith.constant 0 : index
    %c0_86 = arith.constant 0 : index
    %200 = vector.load %arg5[%c1_84, %c0_85, %c0_86] : memref<2x1x32xf32, #tpu.memory_space<vmem>>, vector<1x1x32xf32>
    %201 = vector.shape_cast %200 : vector<1x1x32xf32> to vector<1x32xf32>
    %202 = vector.broadcast %201 : vector<1x32xf32> to vector<16x32xf32>
    %203 = arith.addf %199, %202 : vector<16x32xf32>
    %204 = arith.addf %156, %203 : vector<16x32xf32>
    %c1_87 = arith.constant 1 : index
    %c0_88 = arith.constant 0 : index
    %c0_89 = arith.constant 0 : index
    %205 = vector.load %arg6[%c1_87, %c0_88, %c0_89] : memref<2x1x32xf32, #tpu.memory_space<vmem>>, vector<1x1x32xf32>
    %206 = vector.shape_cast %205 : vector<1x1x32xf32> to vector<1x32xf32>
    %c1_90 = arith.constant 1 : index
    %c0_91 = arith.constant 0 : index
    %c0_92 = arith.constant 0 : index
    %207 = vector.load %arg7[%c1_90, %c0_91, %c0_92] : memref<2x1x32xf32, #tpu.memory_space<vmem>>, vector<1x1x32xf32>
    %208 = vector.shape_cast %207 : vector<1x1x32xf32> to vector<1x32xf32>
    %cst_93 = arith.constant dense<0.000000e+00> : vector<16xf32>
    %209 = vector.multi_reduction <add>, %204, %cst_93 [1] : vector<16x32xf32> to vector<16xf32>
    %210 = vector.shape_cast %209 : vector<16xf32> to vector<16x1xf32>
    %cst_94 = arith.constant 3.200000e+01 : f32
    %211 = vector.broadcast %cst_94 : f32 to vector<16x1xf32>
    %212 = arith.divf %210, %211 : vector<16x1xf32>
    %213 = vector.broadcast %212 : vector<16x1xf32> to vector<16x32xf32>
    %214 = arith.subf %204, %213 : vector<16x32xf32>
    %215 = arith.mulf %214, %214 : vector<16x32xf32>
    %cst_95 = arith.constant dense<0.000000e+00> : vector<16xf32>
    %216 = vector.multi_reduction <add>, %215, %cst_95 [1] : vector<16x32xf32> to vector<16xf32>
    %217 = vector.shape_cast %216 : vector<16xf32> to vector<16x1xf32>
    %cst_96 = arith.constant 3.200000e+01 : f32
    %218 = vector.broadcast %cst_96 : f32 to vector<16x1xf32>
    %219 = arith.divf %217, %218 : vector<16x1xf32>
    %220 = vector.broadcast %212 : vector<16x1xf32> to vector<16x32xf32>
    %221 = arith.subf %204, %220 : vector<16x32xf32>
    %cst_97 = arith.constant 9.99999996E-13 : f32
    %222 = vector.broadcast %cst_97 : f32 to vector<16x1xf32>
    %223 = arith.addf %219, %222 : vector<16x1xf32>
    %224 = math.rsqrt %223 : vector<16x1xf32>
    %225 = vector.broadcast %224 : vector<16x1xf32> to vector<16x32xf32>
    %226 = arith.mulf %221, %225 : vector<16x32xf32>
    %227 = vector.broadcast %206 : vector<1x32xf32> to vector<16x32xf32>
    %228 = arith.mulf %226, %227 : vector<16x32xf32>
    %229 = vector.broadcast %208 : vector<1x32xf32> to vector<16x32xf32>
    %230 = arith.addf %228, %229 : vector<16x32xf32>
    %231 = vector.shape_cast %230 : vector<16x32xf32> to vector<2x8x32xf32>
    %232 = vector.extract_strided_slice %231 {offsets = [0, 0, 0], sizes = [2, 1, 32], strides = [1, 1, 1]} : vector<2x8x32xf32> to vector<2x1x32xf32>
    %233 = vector.shape_cast %232 : vector<2x1x32xf32> to vector<2x32xf32>
    %c1_98 = arith.constant 1 : index
    %c0_99 = arith.constant 0 : index
    %c0_100 = arith.constant 0 : index
    %234 = vector.load %arg8[%c1_98, %c0_99, %c0_100] : memref<2x32x64xf32, #tpu.memory_space<vmem>>, vector<1x32x64xf32>
    %235 = vector.shape_cast %234 : vector<1x32x64xf32> to vector<32x64xf32>
    %cst_101 = arith.constant dense<0.000000e+00> : vector<2x64xf32>
    %236 = tpu.matmul %233, %235, %cst_101 {dimension_numbers = #tpu.dot_dimension_numbers<[1], [0], [0], [1], [0, 0, 1, 1], [], []>} : vector<2x32xf32>, vector<32x64xf32>, vector<2x64xf32> -> vector<2x64xf32>
    %c1_102 = arith.constant 1 : index
    %c0_103 = arith.constant 0 : index
    %c0_104 = arith.constant 0 : index
    %237 = vector.load %arg9[%c1_102, %c0_103, %c0_104] : memref<2x1x64xf32, #tpu.memory_space<vmem>>, vector<1x1x64xf32>
    %238 = vector.shape_cast %237 : vector<1x1x64xf32> to vector<1x64xf32>
    %239 = vector.broadcast %238 : vector<1x64xf32> to vector<2x64xf32>
    %240 = arith.addf %236, %239 : vector<2x64xf32>
    %cst_105 = arith.constant 5.000000e-01 : f32
    %241 = vector.broadcast %cst_105 : f32 to vector<2x64xf32>
    %242 = arith.mulf %241, %240 : vector<2x64xf32>
    %cst_106 = arith.constant 4.471500e-02 : f32
    %243 = vector.broadcast %cst_106 : f32 to vector<2x64xf32>
    %244 = arith.mulf %243, %240 : vector<2x64xf32>
    %245 = arith.mulf %244, %240 : vector<2x64xf32>
    %246 = arith.mulf %245, %240 : vector<2x64xf32>
    %247 = arith.addf %240, %246 : vector<2x64xf32>
    %cst_107 = arith.constant 0.797884583 : f32
    %248 = vector.broadcast %cst_107 : f32 to vector<2x64xf32>
    %249 = arith.mulf %248, %247 : vector<2x64xf32>
    %250 = math.tanh %249 : vector<2x64xf32>
    %cst_108 = arith.constant 1.000000e+00 : f32
    %251 = vector.broadcast %cst_108 : f32 to vector<2x64xf32>
    %252 = arith.addf %251, %250 : vector<2x64xf32>
    %253 = arith.mulf %242, %252 : vector<2x64xf32>
    %c1_109 = arith.constant 1 : index
    %c0_110 = arith.constant 0 : index
    %c0_111 = arith.constant 0 : index
    %254 = vector.load %arg10[%c1_109, %c0_110, %c0_111] : memref<2x64x32xf32, #tpu.memory_space<vmem>>, vector<1x64x32xf32>
    %255 = vector.shape_cast %254 : vector<1x64x32xf32> to vector<64x32xf32>
    %cst_112 = arith.constant dense<0.000000e+00> : vector<2x32xf32>
    %256 = tpu.matmul %253, %255, %cst_112 {dimension_numbers = #tpu.dot_dimension_numbers<[1], [0], [0], [1], [0, 0, 1, 1], [], []>} : vector<2x64xf32>, vector<64x32xf32>, vector<2x32xf32> -> vector<2x32xf32>
    %c1_113 = arith.constant 1 : index
    %c0_114 = arith.constant 0 : index
    %c0_115 = arith.constant 0 : index
    %257 = vector.load %arg11[%c1_113, %c0_114, %c0_115] : memref<2x1x32xf32, #tpu.memory_space<vmem>>, vector<1x1x32xf32>
    %258 = vector.shape_cast %257 : vector<1x1x32xf32> to vector<1x32xf32>
    %259 = vector.broadcast %258 : vector<1x32xf32> to vector<2x32xf32>
    %260 = arith.addf %256, %259 : vector<2x32xf32>
    %261 = arith.addf %233, %260 : vector<2x32xf32>
    %c1_116 = arith.constant 1 : index
    %c0_117 = arith.constant 0 : index
    %c0_118 = arith.constant 0 : index
    %262 = vector.load %arg12[%c1_116, %c0_117, %c0_118] : memref<2x1x32xf32, #tpu.memory_space<vmem>>, vector<1x1x32xf32>
    %263 = vector.shape_cast %262 : vector<1x1x32xf32> to vector<1x32xf32>
    %c1_119 = arith.constant 1 : index
    %c0_120 = arith.constant 0 : index
    %c0_121 = arith.constant 0 : index
    %264 = vector.load %arg13[%c1_119, %c0_120, %c0_121] : memref<2x1x32xf32, #tpu.memory_space<vmem>>, vector<1x1x32xf32>
    %265 = vector.shape_cast %264 : vector<1x1x32xf32> to vector<1x32xf32>
    %cst_122 = arith.constant dense<0.000000e+00> : vector<2xf32>
    %266 = vector.multi_reduction <add>, %261, %cst_122 [1] : vector<2x32xf32> to vector<2xf32>
    %267 = vector.shape_cast %266 : vector<2xf32> to vector<2x1xf32>
    %cst_123 = arith.constant 3.200000e+01 : f32
    %268 = vector.broadcast %cst_123 : f32 to vector<2x1xf32>
    %269 = arith.divf %267, %268 : vector<2x1xf32>
    %270 = vector.broadcast %269 : vector<2x1xf32> to vector<2x32xf32>
    %271 = arith.subf %261, %270 : vector<2x32xf32>
    %272 = arith.mulf %271, %271 : vector<2x32xf32>
    %cst_124 = arith.constant dense<0.000000e+00> : vector<2xf32>
    %273 = vector.multi_reduction <add>, %272, %cst_124 [1] : vector<2x32xf32> to vector<2xf32>
    %274 = vector.shape_cast %273 : vector<2xf32> to vector<2x1xf32>
    %cst_125 = arith.constant 3.200000e+01 : f32
    %275 = vector.broadcast %cst_125 : f32 to vector<2x1xf32>
    %276 = arith.divf %274, %275 : vector<2x1xf32>
    %277 = vector.broadcast %269 : vector<2x1xf32> to vector<2x32xf32>
    %278 = arith.subf %261, %277 : vector<2x32xf32>
    %cst_126 = arith.constant 9.99999996E-13 : f32
    %279 = vector.broadcast %cst_126 : f32 to vector<2x1xf32>
    %280 = arith.addf %276, %279 : vector<2x1xf32>
    %281 = math.rsqrt %280 : vector<2x1xf32>
    %282 = vector.broadcast %281 : vector<2x1xf32> to vector<2x32xf32>
    %283 = arith.mulf %278, %282 : vector<2x32xf32>
    %284 = vector.broadcast %263 : vector<1x32xf32> to vector<2x32xf32>
    %285 = arith.mulf %283, %284 : vector<2x32xf32>
    %286 = vector.broadcast %265 : vector<1x32xf32> to vector<2x32xf32>
    %287 = arith.addf %285, %286 : vector<2x32xf32>
    %c0_127 = arith.constant 0 : index
    %c0_128 = arith.constant 0 : index
    %288 = vector.load %arg16[%c0_127, %c0_128] : memref<32x32xf32, #tpu.memory_space<vmem>>, vector<32x32xf32>
    %cst_129 = arith.constant dense<0.000000e+00> : vector<2x32xf32>
    %289 = tpu.matmul %287, %288, %cst_129 {dimension_numbers = #tpu.dot_dimension_numbers<[1], [0], [0], [1], [0, 0, 1, 1], [], []>} : vector<2x32xf32>, vector<32x32xf32>, vector<2x32xf32> -> vector<2x32xf32>
    %c0_130 = arith.constant 0 : index
    %c0_131 = arith.constant 0 : index
    %290 = vector.load %arg17[%c0_130, %c0_131] : memref<1x32xf32, #tpu.memory_space<vmem>>, vector<1x32xf32>
    %291 = vector.broadcast %290 : vector<1x32xf32> to vector<2x32xf32>
    %292 = arith.addf %289, %291 : vector<2x32xf32>
    %293 = math.tanh %292 : vector<2x32xf32>
    %c0_132 = arith.constant 0 : index
    %c0_133 = arith.constant 0 : index
    %294 = vector.load %arg18[%c0_132, %c0_133] : memref<2x32xf32, #tpu.memory_space<vmem>>, vector<2x32xf32>
    tpu.vector_store %arg18[%c0_132, %c0_133], %293 {strides = array<i32>} : memref<2x32xf32, #tpu.memory_space<vmem>>, vector<2x32xf32>,
    return
  }
}

</mosaic_0001>

<bundles_post_ra>
// kernel: bert_classifier_pretrained_forward.1
= control target key start
LH: loop header
LB: loop body
LE: loop exit
PB: predicated region body
PF: predicated region fallthrough
CT: control target
= control target key end

     0   :  { %s3627_s0 = inlined_call_operand.vmem [shape: f32[16,32], index: 0, kind: input, shape index: {}]   ;;  %s3628_s1 = inlined_call_operand.vmem [shape: f32[2,1,8], index: 1, kind: input, shape index: {}]   ;;  %s3629_s2 = inlined_call_operand.vmem [shape: f32[2,32,96], index: 2, kind: input, shape index: {}]   ;;  %s3630_s3 = inlined_call_operand.vmem [shape: f32[2,1,96], index: 3, kind: input, shape index: {}]   ;;  %s3631_s4 = inlined_call_operand.vmem [shape: f32[2,32,32], index: 4, kind: input, shape index: {}]   ;;  %s3632_s5 = inlined_call_operand.vmem [shape: f32[2,1,32], index: 5, kind: input, shape index: {}]   ;;  %s3633_s6 = inlined_call_operand.vmem [shape: f32[2,1,32], index: 6, kind: input, shape index: {}]   ;;  %s3634_s7 = inlined_call_operand.vmem [shape: f32[2,1,32], index: 7, kind: input, shape index: {}]   ;;  %s3635_s8 = inlined_call_operand.vmem [shape: f32[2,32,64], index: 8, kind: input, shape index: {}]   ;;  %s3636_s9 = inlined_call_operand.vmem [shape: f32[2,1,64], index: 9, kind: input, shape index: {}]   ;;  %s3637_s10 = inlined_call_operand.vmem [shape: f32[2,64,32], index: 10, kind: input, shape index: {}]   ;;  %s3638_s11 = inlined_call_operand.vmem [shape: f32[2,1,32], index: 11, kind: input, shape index: {}]   ;;  %s3639_s12 = inlined_call_operand.vmem [shape: f32[2,1,32], index: 12, kind: input, shape index: {}]   ;;  %s3640_s13 = inlined_call_operand.vmem [shape: f32[2,1,32], index: 13, kind: input, shape index: {}]   ;;  %s3641_s14 = inlined_call_operand.vmem [shape: f32[1,32], index: 14, kind: input, shape index: {}]   ;;  %s3642_s15 = inlined_call_operand.vmem [shape: f32[1,32], index: 15, kind: input, shape index: {}]   ;;  %s3643_s16 = inlined_call_operand.vmem [shape: f32[32,32], index: 16, kind: input, shape index: {}]   ;;  %s3644_s17 = inlined_call_operand.vmem [shape: f32[1,32], index: 17, kind: input, shape index: {}]   ;;  %s3645_s18 = inlined_call_operand.hbm [shape: f32[2,32], index: 18, kind: output, shape index: {}]  }
   0x1   :  { %3649 = sst [smem:[#allocation5_spill]] %s3627_s0 }
   0x2   :  { %3650 = sst [smem:[#allocation6_spill]] %s3628_s1 }
   0x3   :  { %3651 = sst [smem:[#allocation7_spill]] %s3629_s2 }
   0x4   :  { %s3652_s29 = sld [smem:[#allocation5_spill]]  ;;  %vm78_vm0 = vcmask 261120  }
   0xa   :  { %v74_v0 = vld [vmem:[%s3652_s29] sm:$0xff]  ;;  %v75_v1 = vld [vmem:[%s3652_s29 + $0x8] sm:$0xff] }
   0xb   :  { %23 = vsyncpa [#allocation3], 0  ;;  %v79_v2 = vsel %vm78_vm0, %v74_v0, 0.0  ;;  %v82_v3 = vsel %vm78_vm0, %v75_v1, 0.0  ;;  %s3653_s20 = sld [smem:[#allocation7_spill]]  ;;  %v3076_v36 = vmov 0.0  }
   0xc   :  { %80 = vadd.xlane.f32.xlu0 %v79_v2  ;;  %v2534_v27 = vld [vmem:[%s3641_s14] ss:$0 sm:$0xff]  ;;  %2722 = vmatprep.subr.mxu1 %v3076_v36  ;;  %vm3077_vm1 = vmmov 0   ;;  %s3078_s30 = smov 112   ;;  %s3079_s0 = smov 96   ;;  %vm222_vm2 = vcmask 130048  }
   0xd   :  { %v2535_v29 = vld [vmem:[%s3642_s15] ss:$0 sm:$0xff]  ;;  %2724 = vmatprep.mubr.msk.f32.mxu1 %vm3077_vm1, %v3076_v36  ;;  %s3654_s21 = sld [smem:[#allocation6_spill]]  ;;  %vm525_vm3 = vcmask 64512   ;;  %s3080_s23 = smov 64   ;;  %vm1147_vm4 = vcmask 523264  }
   0xe   :  { %v2536_v37 = vld [vmem:[%s3630_s3] ss:$0 sm:$0xff]  ;;  %s3081_s19 = smov 16   ;;  %vm2195_vm5 = vcmask 1041409   ;;  %vm2383_vm6 = vcmask 254976  }
  0x10   :  { %83 = vadd.xlane.f32.xlu0 %v82_v3 }
  0x11   :  { %v122_v14 = vld [vmem:[%s3653_s20] sm:$0xff]  ;;  %v123_v15 = vld [vmem:[%s3653_s20 + $0x8] sm:$0xff]  ;;  %v124_v16 = vld [vmem:[%s3653_s20 + $0x10] sm:$0xff] }
  0x12   :  { %v2906_v17 = vpack.c.bf16 %v123_v15, %v122_v14  ;;  %v125_v18 = vld [vmem:[%s3653_s20 + $0x18] sm:$0xff] }
  0x13   :  { %v2910_v19 = vpack.c.bf16 %v125_v18, %v124_v16  ;;  %v3267_v48 = vld [vmem:[%s3654_s21] ss:$0 sm:$0xff]  ;;  %v3273_v52 = vld [vmem:[%s3654_s21 + $0x1] ss:$0 sm:$0xff] }
  0x14   :  { %2907 = vmatprep.subr.bf16.mxu0 %v2906_v17 }
  0x15   :  { %2909 = vmatpush3.bf16.msra.mxu0 %v2906_v17 }
  0x16   :  { %2911 = vmatprep.subr.bf16.mxu0 %v2910_v19 }
  0x19   :  { %2913 = vmatpush3.bf16.msra.mxu0 %v2910_v19 }
  0x1a   :  { %2742 = vmatprep.subr.mxu0 %v3076_v36 }
  0x99   :  { %v81_v4 = vpop.xlane.xlu0 %80 }
  0x9a   :  { %v86_v5 = vmul.f32 0.03125, %v81_v4 }
  0x9c   :  { %v88_v6 = vsub.f32 %v74_v0, %v86_v5 }
  0x9d   :  { %v84_v7 = vpop.xlane.xlu0 %83 }
  0x9e   :  { %v87_v8 = vmul.f32 0.03125, %v84_v7  ;;  %v90_v9 = vmul.f32 %v88_v6, %v88_v6 }
  0xa0   :  { %v89_v10 = vsub.f32 %v75_v1, %v87_v8  ;;  %v92_v11 = vsel %vm78_vm0, %v90_v9, 0.0 }
  0xa1   :  { %93 = vadd.xlane.f32.xlu1 %v92_v11 }
  0xa2   :  { %v91_v12 = vmul.f32 %v89_v10, %v89_v10 }
  0xa4   :  { %v95_v13 = vsel %vm78_vm0, %v91_v12, 0.0 }
  0xa5   :  { %96 = vadd.xlane.f32.xlu1 %v95_v13 }
 0x12e   :  { %v94_v20 = vpop.xlane.xlu1 %93 }
 0x12f   :  { %v98_v21 = vmul.f32 0.03125, %v94_v20 }
 0x131   :  { %v100_v22 = vadd.f32 1e-12, %v98_v21 }
 0x132   :  { %v97_v23 = vpop.xlane.xlu1 %96 }
 0x133   :  { %2994 = vrsqrt.f32 %v100_v22  ;;  %v99_v24 = vmul.f32 0.03125, %v97_v23 }
 0x135   :  { %v101_v25 = vadd.f32 1e-12, %v99_v24 }
 0x137   :  { %2996 = vrsqrt.f32 %v101_v25 }
 0x13d   :  { %v2995_v26 = vpop.eup %2994 }
 0x13e   :  { %v104_v28 = vmul.f32 %v2995_v26, %v88_v6 }
 0x140   :  { %v112_v30 = vmul.f32 %v2534_v27, %v104_v28 }
 0x141   :  { %v2997_v31 = vpop.eup %2996 }
 0x142   :  { %v105_v32 = vmul.f32 %v2997_v31, %v89_v10  ;;  %v3207_v33 = vadd.f32 %v2535_v29, %v112_v30 }
 0x144   :  { %v113_v34 = vmul.f32 %v2534_v27, %v105_v32  ;;  %2719 = vmatprep.mubr.msk.f32.mxu0 %vm78_vm0, %v3207_v33 }
 0x146   :  { %v3211_v35 = vadd.f32 %v2535_v29, %v113_v34 }
 0x148   :  { %2720 = vmatmul.mubr.msk.f32.vlgmr.msra.gmra.mrb[0].mxu0 %vm78_vm0, %v3211_v35 }
 0x149   :  { %2744 = vmatprep.mubr.msk.f32.mxu0 %vm3077_vm1, %v3076_v36 }
 0x21b   :  { %v2721_v38 = vpop.f32.mrb[0].mxu0 }
 0x21c   :  { %v3224_v39 = vadd.f32 %v2721_v38, %v2536_v37  ;;  %v205_v40 = vpop.f32.mrb[1].mxu0 }
 0x21d   :  { %v3226_v41 = vadd.f32 %v2536_v37, %v205_v40 }
 0x21e   :  { %218 = vrot.lane.b32.xlu1 %v3224_v39, %s3078_s30 }
 0x21f   :  { %216 = vrot.lane.b32.xlu0 %v3226_v41, %s3078_s30 }
 0x222   :  { %220 = vrot.lane.b32.xlu1 %v3226_v41, %s3079_s0 }
 0x226   :  { %297 = vrot.lane.b32.xlu1 %v3224_v39, %s3079_s0 }
 0x290   :  { %v3236_v42 = vpop.permute.xlu1 %218 }
 0x291   :  { %449 = vrot.lane.b32.xlu1 %v3236_v42, %s3079_s0  ;;  %v217_v43 = vpop.permute.xlu0 %216 }
 0x292   :  { %373 = vrot.lane.b32.xlu0 %v217_v43, %s3079_s0 }
 0x294   :  { %v221_v44 = vpop.permute.xlu1 %220 }
 0x295   :  { %2723 = vmatpush3.xpose.msk.msra.mxu1 %vm222_vm2, %v221_v44 }
 0x296   :  { %2727 = vmatprep.subr.mxu1 %v3076_v36 }
 0x298   :  { %2725 = vmatmul.mubr.msk.f32.vlgmr.msra.gmra.mrb[0].mxu1 %vm222_vm2, %v3226_v41  ;;  %v298_v45 = vpop.permute.xlu1 %297 }
 0x299   :  { %2728 = vmatpush3.xpose.msk.msra.mxu1 %vm222_vm2, %v298_v45  ;;  %2729 = vmatprep.mubr.msk.f32.mxu1 %vm3077_vm1, %v3076_v36 }
 0x29a   :  { %2732 = vmatprep.subr.mxu1 %v3076_v36 }
 0x29c   :  { %2730 = vmatmul.mubr.msk.f32.vlgmr.msra.gmra.mrb[2].mxu1 %vm222_vm2, %v3224_v39 }
 0x29d   :  { %2734 = vmatprep.mubr.msk.f32.mxu1 %vm3077_vm1, %v3076_v36 }
 0x303   :  { %v450_v47 = vpop.permute.xlu1 %449 }
 0x304   :  { %v374_v46 = vpop.permute.xlu0 %373 }
 0x305   :  { %2733 = vmatpush3.xpose.msk.msra.mxu1 %vm222_vm2, %v374_v46  ;;  %v886_v46 = vld [vmem:[%s3631_s4 + $0x10] sm:$0xff] }
 0x306   :  { %2737 = vmatprep.subr.mxu1 %v3076_v36 }
 0x308   :  { %2735 = vmatmul.mubr.msk.f32.vlgmr.msra.gmra.mrb[4].mxu1 %vm222_vm2, %v217_v43 }
 0x309   :  { %2738 = vmatpush3.xpose.msk.msra.mxu1 %vm222_vm2, %v450_v47  ;;  %2739 = vmatprep.mubr.msk.f32.mxu1 %vm3077_vm1, %v3076_v36  ;;  %v887_v47 = vld [vmem:[%s3631_s4 + $0x18] sm:$0xff] }
 0x30a   :  { %2747 = vmatprep.subr.mxu1 %v3076_v36 }
 0x30c   :  { %2740 = vmatmul.mubr.msk.f32.vlgmr.msra.gmra.mrb[6].mxu1 %vm222_vm2, %v3236_v42 }
 0x30d   :  { %2749 = vmatprep.mubr.msk.f32.mxu1 %vm3077_vm1, %v3076_v36 }
 0x36b   :  { %v293_v49 = vpop.f32.mrb[0].mxu1 }
 0x36c   :  { %v294_v50 = vadd.f32 %v3267_v48, %v293_v49  ;;  %v2726_v51 = vpop.f32.mrb[1].mxu1  ;;  %v2918_v49 = vpack.c.bf16 %v887_v47, %v886_v46  ;;  %v1137_v46 = vld [vmem:[%s3637_s10 + $0x28] sm:$0xff] }
 0x36e   :  { %v526_v53 = vsel %vm525_vm3, %v294_v50, -inf }
 0x36f   :  { %v369_v54 = vpop.f32.mrb[2].mxu1  ;;  %527 = vmax.xlane.f32.xlu0 %v526_v53 }
 0x370   :  { %v370_v55 = vadd.f32 %v3273_v52, %v369_v54  ;;  %v2731_v56 = vpop.f32.mrb[3].mxu1 }
 0x372   :  { %v529_v57 = vsel %vm525_vm3, %v370_v55, -inf }
 0x373   :  { %530 = vmax.xlane.f32.xlu1 %v529_v57 }
 0x3db   :  { %v445_v58 = vpop.f32.mrb[4].mxu1 }
 0x3dc   :  { %v446_v59 = vadd.f32 %v3267_v48, %v445_v58  ;;  %v2736_v60 = vpop.f32.mrb[5].mxu1 }
 0x3de   :  { %v532_v61 = vsel %vm525_vm3, %v446_v59, -inf }
 0x3df   :  { %v521_v62 = vpop.f32.mrb[6].mxu1  ;;  %533 = vmax.xlane.f32.xlu0 %v532_v61  ;;  %v2551_v61 = vld [vmem:[%s3632_s5] ss:$0 sm:$0xff] }
 0x3e0   :  { %v522_v63 = vadd.f32 %v3273_v52, %v521_v62  ;;  %v2741_v0 = vpop.f32.mrb[7].mxu1 }
 0x3e2   :  { %v535_v1 = vsel %vm525_vm3, %v522_v63, -inf }
 0x3e3   :  { %536 = vmax.xlane.f32.xlu0 %v535_v1 }
 0x3fc   :  { %v528_v2 = vpop.xlane.xlu0 %527 }
 0x3fd   :  { %v538_v3 = vsub.f32 %v294_v50, %v528_v2 }
 0x3ff   :  { %v542_v4 = vmul.f32 1.442695, %v538_v3 }
 0x400   :  { %v531_v5 = vpop.xlane.xlu1 %530 }
 0x401   :  { %2998 = vpow2.f32 %v542_v4  ;;  %v539_v6 = vsub.f32 %v370_v55, %v531_v5 }
 0x403   :  { %v544_v7 = vmul.f32 1.442695, %v539_v6 }
 0x405   :  { %3000 = vpow2.f32 %v544_v7 }
 0x40b   :  { %v2999_v8 = vpop.eup %2998 }
 0x40c   :  { %v550_v9 = vsel %vm525_vm3, %v2999_v8, 0.0 }
 0x40d   :  { %551 = vadd.xlane.f32.xlu0 %v550_v9 }
 0x40f   :  { %v3001_v10 = vpop.eup %3000 }
 0x410   :  { %v553_v11 = vsel %vm525_vm3, %v3001_v10, 0.0 }
 0x411   :  { %554 = vadd.xlane.f32.xlu1 %v553_v11 }
 0x422   :  { %646 = vrot.lane.b32.xlu1 %v3224_v39, %s3080_s23 }
 0x426   :  { %722 = vrot.lane.b32.xlu1 %v217_v43, %s3080_s23 }
 0x46c   :  { %v534_v12 = vpop.xlane.xlu0 %533 }
 0x46d   :  { %v540_v13 = vsub.f32 %v446_v59, %v534_v12 }
 0x46f   :  { %v546_v14 = vmul.f32 1.442695, %v540_v13 }
 0x470   :  { %v537_v15 = vpop.xlane.xlu0 %536 }
 0x471   :  { %3002 = vpow2.f32 %v546_v14  ;;  %v541_v16 = vsub.f32 %v522_v63, %v537_v15  ;;  %v1023_v15 = vld [vmem:[%s3635_s8 + $0x8] sm:$0xff] }
 0x473   :  { %v548_v17 = vmul.f32 1.442695, %v541_v16 }
 0x475   :  { %3004 = vpow2.f32 %v548_v17  ;;  %v1024_v17 = vld [vmem:[%s3635_s8 + $0x10] sm:$0xff] }
 0x47b   :  { %v3003_v18 = vpop.eup %3002 }
 0x47c   :  { %v556_v19 = vsel %vm525_vm3, %v3003_v18, 0.0 }
 0x47d   :  { %557 = vadd.xlane.f32.xlu0 %v556_v19 }
 0x47f   :  { %v3005_v20 = vpop.eup %3004 }
 0x480   :  { %v559_v21 = vsel %vm525_vm3, %v3005_v20, 0.0 }
 0x481   :  { %560 = vadd.xlane.f32.xlu1 %v559_v21 }
 0x492   :  { %798 = vrot.lane.b32.xlu1 %v3236_v42, %s3080_s23  ;;  %v885_v42 = vld [vmem:[%s3631_s4 + $0x8] sm:$0xff] }
 0x493   :  { %570 = vrot.lane.b32.xlu0 %v3226_v41, %s3080_s23  ;;  %v884_v41 = vld [vmem:[%s3631_s4] sm:$0xff] }
 0x494   :  { %v2914_v43 = vpack.c.bf16 %v885_v42, %v884_v41  ;;  %v1134_v42 = vld [vmem:[%s3637_s10 + $0x10] sm:$0xff] }
 0x49a   :  { %v552_v26 = vpop.xlane.xlu0 %551 }
 0x49e   :  { %v555_v22 = vpop.xlane.xlu1 %554 }
 0x49f   :  { %3006 = vrcp.f32 %v555_v22 }
 0x4a0   :  { %3008 = vrcp.f32 %v552_v26 }
 0x4a2   :  { %v647_v23 = vpop.permute.xlu1 %646 }
 0x4a3   :  { %2748 = vmatpush3.msra.mxu1 %v647_v23 }
 0x4a4   :  { %2757 = vmatprep.subr.mxu1 %v3076_v36 }
 0x4a6   :  { %v723_v27 = vpop.permute.xlu1 %722 }
 0x4a9   :  { %v3007_v24 = vpop.eup %3006 }
 0x4aa   :  { %v567_v25 = vmul.f32 %v3007_v24, %v3001_v10  ;;  %v3009_v29 = vpop.eup %3008 }
 0x4ab   :  { %v566_v30 = vmul.f32 %v3009_v29, %v2999_v8  ;;  %v2555_v29 = vld [vmem:[%s3634_s7] ss:$0 sm:$0xff] }
 0x4ac   :  { %2750 = vmatmul.mubr.msk.f32.vlgmr.msra.gmra.mrb[8].mxu1 %vm525_vm3, %v567_v25 }
 0x4ad   :  { %2759 = vmatprep.mubr.msk.f32.mxu1 %vm3077_vm1, %v3076_v36 }
 0x50a   :  { %v558_v28 = vpop.xlane.xlu0 %557 }
 0x50b   :  { %3010 = vrcp.f32 %v558_v28 }
 0x50e   :  { %v561_v31 = vpop.xlane.xlu1 %560  ;;  %v571_v32 = vpop.permute.xlu0 %570 }
 0x50f   :  { %3012 = vrcp.f32 %v561_v31  ;;  %2743 = vmatpush3.msra.mxu0 %v571_v32 }
 0x510   :  { %2745 = vmatmul.mubr.msk.f32.vlgmr.msra.gmra.mrb[2].mxu0 %vm525_vm3, %v566_v30  ;;  %2752 = vmatprep.subr.mxu0 %v3076_v36 }
 0x511   :  { %2753 = vmatpush3.msra.mxu0 %v723_v27  ;;  %2754 = vmatprep.mubr.msk.f32.mxu0 %vm3077_vm1, %v3076_v36  ;;  %v2554_v27 = vld [vmem:[%s3633_s6] ss:$0 sm:$0xff] }
 0x512   :  { %v799_v34 = vpop.permute.xlu1 %798  ;;  %2915 = vmatprep.subr.bf16.mxu0 %v2914_v43 }
 0x513   :  { %2758 = vmatpush3.msra.mxu1 %v799_v34 }
 0x515   :  { %v3011_v37 = vpop.eup %3010 }
 0x516   :  { %v568_v38 = vmul.f32 %v3011_v37, %v3003_v18  ;;  %v1025_v18 = vld [vmem:[%s3635_s8 + $0x18] sm:$0xff] }
 0x517   :  { %v2926_v19 = vpack.c.bf16 %v1025_v18, %v1024_v17 }
 0x518   :  { %2755 = vmatmul.mubr.msk.f32.vlgmr.msra.gmra.mrb[4].mxu0 %vm525_vm3, %v568_v38 }
 0x519   :  { %v3013_v39 = vpop.eup %3012  ;;  %2917 = vmatpush3.bf16.msra.mxu0 %v2914_v43  ;;  %v1135_v43 = vld [vmem:[%s3637_s10 + $0x18] sm:$0xff] }
 0x51a   :  { %v569_v40 = vmul.f32 %v3013_v39, %v3005_v20  ;;  %2919 = vmatprep.subr.bf16.mxu0 %v2918_v49  ;;  %v1132_v39 = vld [vmem:[%s3637_s10] sm:$0xff] }
 0x51c   :  { %2760 = vmatmul.mubr.msk.f32.vlgmr.msra.gmra.mrb[10].mxu1 %vm525_vm3, %v569_v40  ;;  %v1133_v40 = vld [vmem:[%s3637_s10 + $0x8] sm:$0xff] }
 0x51d   :  { %2921 = vmatpush3.bf16.msra.mxu0 %v2918_v49  ;;  %v2930_v41 = vpack.c.bf16 %v1133_v40, %v1132_v39  ;;  %v1138_v49 = vld [vmem:[%s3637_s10 + $0x30] sm:$0xff] }
 0x51f   :  { %2931 = vmatprep.subr.bf16.mxu0 %v2930_v41 }
 0x57f   :  { %v718_v44 = vpop.f32.mrb[8].mxu1 }
 0x580   :  { %v2751_v45 = vpop.f32.mrb[9].mxu1 }
 0x581   :  { %v2934_v45 = vpack.c.bf16 %v1135_v43, %v1134_v42 }
 0x5e3   :  { %v642_v50 = vpop.f32.mrb[2].mxu0 }
 0x5e4   :  { %v2746_v51 = vpop.f32.mrb[3].mxu0 }
 0x5eb   :  { %v794_v53 = vpop.f32.mrb[4].mxu0 }
 0x5ec   :  { %876 = vrot.lane.b32.xlu0 %v794_v53, %s3081_s19  ;;  %v2756_v54 = vpop.f32.mrb[5].mxu0  ;;  %v2556_v53 = vld [vmem:[%s3636_s9] ss:$0 sm:$0xff] }
 0x5ef   :  { %v870_v55 = vpop.f32.mrb[10].mxu1 }
 0x5f0   :  { %878 = vrot.lane.b32.xlu1 %v870_v55, %s3081_s19  ;;  %v2761_v56 = vpop.f32.mrb[11].mxu1 }
 0x65e   :  { %v877_v57 = vpop.permute.xlu0 %876 }
 0x65f   :  { %v882_v58 = vsel %vm222_vm2, %v642_v50, %v877_v57  ;;  %v1139_v50 = vld [vmem:[%s3637_s10 + $0x38] sm:$0xff] }
 0x660   :  { %2770 = vmatprep.mubr.msk.f32.mxu0 %vm78_vm0, %v882_v58  ;;  %v2942_v51 = vpack.c.bf16 %v1139_v50, %v1138_v49  ;;  %v2563_v50 = vld [vmem:[%s3640_s13] ss:$0 sm:$0xff] }
 0x662   :  { %v879_v59 = vpop.permute.xlu1 %878 }
 0x663   :  { %v883_v60 = vsel %vm222_vm2, %v718_v44, %v879_v59  ;;  %v1136_v44 = vld [vmem:[%s3637_s10 + $0x20] sm:$0xff] }
 0x664   :  { %2771 = vmatmul.mubr.msk.f32.vlgmr.msra.gmra.mrb[6].mxu0 %vm78_vm0, %v883_v60  ;;  %v2938_v47 = vpack.c.bf16 %v1137_v46, %v1136_v44 }
 0x665   :  { %2933 = vmatpush3.bf16.msra.mxu0 %v2930_v41 }
 0x666   :  { %2935 = vmatprep.subr.bf16.mxu0 %v2934_v45 }
 0x669   :  { %2937 = vmatpush3.bf16.msra.mxu0 %v2934_v45  ;;  %v2562_v45 = vld [vmem:[%s3639_s12] ss:$0 sm:$0xff] }
 0x66a   :  { %2939 = vmatprep.subr.bf16.mxu0 %v2938_v47 }
 0x66d   :  { %2941 = vmatpush3.bf16.msra.mxu0 %v2938_v47 }
 0x66e   :  { %2943 = vmatprep.subr.bf16.mxu0 %v2942_v51 }
 0x671   :  { %2945 = vmatpush3.bf16.msra.mxu0 %v2942_v51 }
 0x672   :  { %2824 = vmatprep.subr.mxu0 %v3076_v36 }
 0x737   :  { %v2772_v62 = vpop.f32.mrb[6].mxu0 }
 0x738   :  { %v973_v63 = vadd.f32 %v2772_v62, %v2551_v61  ;;  %v967_v0 = vpop.f32.mrb[7].mxu0 }
 0x739   :  { %v968_v1 = vadd.f32 %v2551_v61, %v967_v0 }
 0x73a   :  { %v977_v2 = vadd.f32 %v973_v63, %v3211_v35 }
 0x73b   :  { %v976_v3 = vadd.f32 %v968_v1, %v3207_v33  ;;  %v1022_v33 = vld [vmem:[%s3635_s8] sm:$0xff] }
 0x73c   :  { %v983_v4 = vsel %vm78_vm0, %v977_v2, 0.0  ;;  %v2922_v16 = vpack.c.bf16 %v1023_v15, %v1022_v33 }
 0x73d   :  { %984 = vadd.xlane.f32.xlu1 %v983_v4  ;;  %v980_v5 = vsel %vm78_vm0, %v976_v3, 0.0 }
 0x73e   :  { %981 = vadd.xlane.f32.xlu0 %v980_v5  ;;  %2923 = vmatprep.subr.bf16.mxu1 %v2922_v16 }
 0x73f   :  { %2925 = vmatpush3.bf16.msra.mxu1 %v2922_v16 }
 0x740   :  { %2927 = vmatprep.subr.bf16.mxu1 %v2926_v19 }
 0x743   :  { %2929 = vmatpush3.bf16.msra.mxu1 %v2926_v19 }
 0x7ca   :  { %v985_v6 = vpop.xlane.xlu1 %984 }
 0x7cb   :  { %v987_v7 = vmul.f32 0.03125, %v985_v6  ;;  %v982_v8 = vpop.xlane.xlu0 %981 }
 0x7cc   :  { %v986_v9 = vmul.f32 0.03125, %v982_v8 }
 0x7cd   :  { %v989_v10 = vsub.f32 %v977_v2, %v987_v7 }
 0x7ce   :  { %v988_v11 = vsub.f32 %v976_v3, %v986_v9 }
 0x7cf   :  { %v991_v14 = vmul.f32 %v989_v10, %v989_v10 }
 0x7d0   :  { %v990_v12 = vmul.f32 %v988_v11, %v988_v11 }
 0x7d1   :  { %v995_v35 = vsel %vm78_vm0, %v991_v14, 0.0 }
 0x7d2   :  { %v992_v13 = vsel %vm78_vm0, %v990_v12, 0.0  ;;  %v2559_v12 = vld [vmem:[%s3638_s11] ss:$0 sm:$0xff] }
 0x7d3   :  { %993 = vadd.xlane.f32.xlu0 %v992_v13 }
 0x7d7   :  { %996 = vadd.xlane.f32.xlu0 %v995_v35 }
 0x860   :  { %v994_v20 = vpop.xlane.xlu0 %993 }
 0x861   :  { %v998_v21 = vmul.f32 0.03125, %v994_v20 }
 0x863   :  { %v1000_v22 = vadd.f32 1e-12, %v998_v21 }
 0x864   :  { %v997_v23 = vpop.xlane.xlu0 %996 }
 0x865   :  { %3014 = vrsqrt.f32 %v1000_v22  ;;  %v999_v24 = vmul.f32 0.03125, %v997_v23 }
 0x867   :  { %v1001_v25 = vadd.f32 1e-12, %v999_v24 }
 0x869   :  { %3016 = vrsqrt.f32 %v1001_v25 }
 0x86f   :  { %v3015_v26 = vpop.eup %3014 }
 0x870   :  { %v1004_v28 = vmul.f32 %v3015_v26, %v988_v11 }
 0x872   :  { %v1012_v30 = vmul.f32 %v2554_v27, %v1004_v28 }
 0x873   :  { %v3017_v31 = vpop.eup %3016 }
 0x874   :  { %v1005_v32 = vmul.f32 %v3017_v31, %v989_v10  ;;  %v1020_v34 = vadd.f32 %v2555_v29, %v1012_v30  ;;  %v2565_v30 = vld [vmem:[%s3653_s20 + $0x28] sm:$0xff] }
 0x876   :  { %v1013_v37 = vmul.f32 %v2554_v27, %v1005_v32  ;;  %2781 = vmatprep.mubr.msk.f32.mxu1 %vm78_vm0, %v1020_v34  ;;  %v2566_v32 = vld [vmem:[%s3653_s20 + $0x30] sm:$0xff] }
 0x878   :  { %v1021_v38 = vadd.f32 %v2555_v29, %v1013_v37  ;;  %v2564_v29 = vld [vmem:[%s3653_s20 + $0x20] sm:$0xff] }
 0x879   :  { %v2946_v31 = vpack.c.bf16 %v2565_v30, %v2564_v29 }
 0x87a   :  { %2782 = vmatmul.mubr.msk.f32.vlgmr.msra.gmra.mrb[12].mxu1 %vm78_vm0, %v1021_v38 }
 0x87b   :  { %2947 = vmatprep.subr.bf16.mxu1 %v2946_v31 }
 0x87c   :  { %2949 = vmatpush3.bf16.msra.mxu1 %v2946_v31 }
 0x94d   :  { %v2783_v54 = vpop.f32.mrb[12].mxu1 }
 0x94e   :  { %v1111_v55 = vadd.f32 %v2783_v54, %v2556_v53  ;;  %v1105_v56 = vpop.f32.mrb[13].mxu1 }
 0x94f   :  { %v1106_v57 = vadd.f32 %v2556_v53, %v1105_v56  ;;  %v2569_v56 = vld [vmem:[%s3630_s3 + $0x1] ss:$0 sm:$0xff] }
 0x950   :  { %v1117_v58 = vmul.f32 0.044715, %v1111_v55  ;;  %v1115_v9 = vmul.f32 0.5, %v1111_v55 }
 0x951   :  { %v1116_v59 = vmul.f32 0.044715, %v1106_v57  ;;  %v1114_v7 = vmul.f32 0.5, %v1106_v57 }
 0x952   :  { %v1119_v60 = vmul.f32 %v1117_v58, %v1111_v55 }
 0x953   :  { %v1118_v61 = vmul.f32 %v1116_v59, %v1106_v57 }
 0x954   :  { %v1121_v62 = vmul.f32 %v1119_v60, %v1111_v55 }
 0x955   :  { %v1120_v63 = vmul.f32 %v1118_v61, %v1106_v57 }
 0x956   :  { %v1123_v0 = vadd.f32 %v1121_v62, %v1111_v55 }
 0x957   :  { %v1122_v1 = vadd.f32 %v1120_v63, %v1106_v57 }
 0x958   :  { %v1125_v2 = vmul.f32 0.7978846, %v1123_v0 }
 0x959   :  { %v1124_v3 = vmul.f32 0.7978846, %v1122_v1 }
 0x95a   :  { %3018 = vtanh.f32 %v1125_v2 }
 0x95b   :  { %3020 = vtanh.f32 %v1124_v3 }
 0x964   :  { %v3019_v4 = vpop.eup %3018 }
 0x965   :  { %v3021_v5 = vpop.eup %3020  ;;  %v1129_v6 = vadd.f32 1.0, %v3019_v4 }
 0x966   :  { %v1128_v8 = vadd.f32 1.0, %v3021_v5 }
 0x967   :  { %v1131_v11 = vmul.f32 %v1129_v6, %v1115_v9 }
 0x968   :  { %v1130_v10 = vmul.f32 %v1128_v8, %v1114_v7 }
 0x96a   :  { %2800 = vmatprep.mubr.msk.f32.mxu0 %vm1147_vm4, %v1130_v10 }
 0x96b   :  { %2801 = vmatmul.mubr.msk.f32.vlgmr.msra.gmra.mrb[8].mxu0 %vm1147_vm4, %v1131_v11 }
 0x96c   :  { %2826 = vmatprep.mubr.msk.f32.mxu0 %vm3077_vm1, %v3076_v36 }
 0xa3e   :  { %v2802_v13 = vpop.f32.mrb[8].mxu0 }
 0xa3f   :  { %v1226_v14 = vadd.f32 %v2802_v13, %v2559_v12  ;;  %v1220_v35 = vpop.f32.mrb[9].mxu0 }
 0xa40   :  { %v1221_v33 = vadd.f32 %v2559_v12, %v1220_v35 }
 0xa41   :  { %v1230_v15 = vadd.f32 %v1226_v14, %v1021_v38 }
 0xa42   :  { %v1229_v16 = vadd.f32 %v1221_v33, %v1020_v34  ;;  %v2567_v34 = vld [vmem:[%s3653_s20 + $0x38] sm:$0xff] }
 0xa43   :  { %v1236_v17 = vsel %vm78_vm0, %v1230_v15, 0.0  ;;  %v2950_v37 = vpack.c.bf16 %v2567_v34, %v2566_v32 }
 0xa44   :  { %1237 = vadd.xlane.f32.xlu1 %v1236_v17  ;;  %v1233_v18 = vsel %vm78_vm0, %v1229_v16, 0.0 }
 0xa45   :  { %1234 = vadd.xlane.f32.xlu0 %v1233_v18  ;;  %2951 = vmatprep.subr.bf16.mxu1 %v2950_v37 }
 0xa46   :  { %2953 = vmatpush3.bf16.msra.mxu1 %v2950_v37 }
 0xa47   :  { %2814 = vmatprep.subr.mxu1 %v3076_v36 }
 0xad1   :  { %v1238_v19 = vpop.xlane.xlu1 %1237 }
 0xad2   :  { %v1240_v20 = vmul.f32 0.03125, %v1238_v19  ;;  %v1235_v21 = vpop.xlane.xlu0 %1234 }
 0xad3   :  { %v1239_v22 = vmul.f32 0.03125, %v1235_v21 }
 0xad4   :  { %v1242_v23 = vsub.f32 %v1230_v15, %v1240_v20 }
 0xad5   :  { %v1241_v24 = vsub.f32 %v1229_v16, %v1239_v22 }
 0xad6   :  { %v1244_v25 = vmul.f32 %v1242_v23, %v1242_v23 }
 0xad7   :  { %v1243_v26 = vmul.f32 %v1241_v24, %v1241_v24 }
 0xad8   :  { %v1248_v27 = vsel %vm78_vm0, %v1244_v25, 0.0 }
 0xad9   :  { %1249 = vadd.xlane.f32.xlu1 %v1248_v27  ;;  %v1245_v28 = vsel %vm78_vm0, %v1243_v26, 0.0 }
 0xada   :  { %1246 = vadd.xlane.f32.xlu0 %v1245_v28 }
 0xb66   :  { %v1250_v38 = vpop.xlane.xlu1 %1249 }
 0xb67   :  { %v1252_v39 = vmul.f32 0.03125, %v1250_v38  ;;  %v1247_v40 = vpop.xlane.xlu0 %1246 }
 0xb68   :  { %v1251_v41 = vmul.f32 0.03125, %v1247_v40 }
 0xb69   :  { %v1254_v42 = vadd.f32 1e-12, %v1252_v39 }
 0xb6a   :  { %v1253_v43 = vadd.f32 1e-12, %v1251_v41 }
 0xb6b   :  { %3022 = vrsqrt.f32 %v1254_v42 }
 0xb6c   :  { %3024 = vrsqrt.f32 %v1253_v43 }
 0xb75   :  { %v3023_v44 = vpop.eup %3022 }
 0xb76   :  { %v3025_v46 = vpop.eup %3024  ;;  %v1258_v47 = vmul.f32 %v3023_v44, %v1242_v23 }
 0xb77   :  { %v1257_v49 = vmul.f32 %v3025_v46, %v1241_v24 }
 0xb78   :  { %v1266_v51 = vmul.f32 %v2562_v45, %v1258_v47 }
 0xb79   :  { %v1265_v53 = vmul.f32 %v2562_v45, %v1257_v49 }
 0xb7a   :  { %v3410_v55 = vadd.f32 %v2563_v50, %v1266_v51 }
 0xb7b   :  { %v3408_v54 = vadd.f32 %v2563_v50, %v1265_v53 }
 0xb7d   :  { %2811 = vmatprep.mubr.msk.f32.mxu1 %vm78_vm0, %v3408_v54 }
 0xb7e   :  { %2812 = vmatmul.mubr.msk.f32.vlgmr.msra.gmra.mrb[14].mxu1 %vm78_vm0, %v3410_v55 }
 0xb7f   :  { %2816 = vmatprep.mubr.msk.f32.mxu1 %vm3077_vm1, %v3076_v36 }
 0xc51   :  { %v2813_v57 = vpop.f32.mrb[14].mxu1 }
 0xc52   :  { %v3421_v58 = vadd.f32 %v2813_v57, %v2569_v56  ;;  %v1360_v59 = vpop.f32.mrb[15].mxu1 }
 0xc53   :  { %v3423_v60 = vadd.f32 %v2569_v56, %v1360_v59  ;;  %v2585_v59 = vld [vmem:[%s3631_s4 + $0x28] sm:$0xff] }
 0xc54   :  { %1373 = vrot.lane.b32.xlu1 %v3421_v58, %s3078_s30 }
 0xc55   :  { %1371 = vrot.lane.b32.xlu0 %v3423_v60, %s3078_s30 }
 0xc58   :  { %1375 = vrot.lane.b32.xlu1 %v3423_v60, %s3079_s0 }
 0xc5c   :  { %1451 = vrot.lane.b32.xlu1 %v3421_v58, %s3079_s0 }
 0xcc6   :  { %v3433_v61 = vpop.permute.xlu1 %1373 }
 0xcc7   :  { %1603 = vrot.lane.b32.xlu1 %v3433_v61, %s3079_s0  ;;  %v3437_v62 = vpop.permute.xlu0 %1371 }
 0xcc8   :  { %1527 = vrot.lane.b32.xlu0 %v3437_v62, %s3079_s0 }
 0xcca   :  { %v1376_v63 = vpop.permute.xlu1 %1375 }
 0xccb   :  { %2815 = vmatpush3.xpose.msk.msra.mxu1 %vm222_vm2, %v1376_v63 }
 0xccc   :  { %2819 = vmatprep.subr.mxu1 %v3076_v36 }
 0xcce   :  { %2817 = vmatmul.mubr.msk.f32.vlgmr.msra.gmra.mrb[16].mxu1 %vm222_vm2, %v3423_v60  ;;  %v1452_v0 = vpop.permute.xlu1 %1451 }
 0xccf   :  { %2820 = vmatpush3.xpose.msk.msra.mxu1 %vm222_vm2, %v1452_v0  ;;  %2821 = vmatprep.mubr.msk.f32.mxu1 %vm3077_vm1, %v3076_v36 }
 0xcd0   :  { %2829 = vmatprep.subr.mxu1 %v3076_v36 }
 0xcd2   :  { %2822 = vmatmul.mubr.msk.f32.vlgmr.msra.gmra.mrb[18].mxu1 %vm222_vm2, %v3421_v58 }
 0xcd3   :  { %2831 = vmatprep.mubr.msk.f32.mxu1 %vm3077_vm1, %v3076_v36 }
 0xd39   :  { %v1604_v1 = vpop.permute.xlu1 %1603 }
 0xd3a   :  { %2830 = vmatpush3.xpose.msk.msra.mxu1 %vm222_vm2, %v1604_v1  ;;  %v1528_v2 = vpop.permute.xlu0 %1527 }
 0xd3b   :  { %2825 = vmatpush3.xpose.msk.msra.mxu0 %vm222_vm2, %v1528_v2  ;;  %2839 = vmatprep.subr.mxu1 %v3076_v36 }
 0xd3c   :  { %2834 = vmatprep.subr.mxu0 %v3076_v36 }
 0xd3d   :  { %2832 = vmatmul.mubr.msk.f32.vlgmr.msra.gmra.mrb[20].mxu1 %vm222_vm2, %v3433_v61 }
 0xd3e   :  { %2827 = vmatmul.mubr.msk.f32.vlgmr.msra.gmra.mrb[10].mxu0 %vm222_vm2, %v3437_v62  ;;  %2841 = vmatprep.mubr.msk.f32.mxu1 %vm3077_vm1, %v3076_v36 }
 0xd3f   :  { %2836 = vmatprep.mubr.msk.f32.mxu0 %vm3077_vm1, %v3076_v36 }
 0xda1   :  { %v1447_v3 = vpop.f32.mrb[16].mxu1 }
 0xda2   :  { %v1448_v4 = vadd.f32 %v3267_v48, %v1447_v3  ;;  %v2818_v5 = vpop.f32.mrb[17].mxu1 }
 0xda4   :  { %v1679_v6 = vsel %vm525_vm3, %v1448_v4, -inf }
 0xda5   :  { %v1523_v7 = vpop.f32.mrb[18].mxu1  ;;  %1680 = vmax.xlane.f32.xlu0 %v1679_v6 }
 0xda6   :  { %v1524_v8 = vadd.f32 %v3273_v52, %v1523_v7  ;;  %v2823_v9 = vpop.f32.mrb[19].mxu1 }
 0xda8   :  { %v1682_v10 = vsel %vm525_vm3, %v1524_v8, -inf }
 0xda9   :  { %1683 = vmax.xlane.f32.xlu1 %v1682_v10 }
 0xe10   :  { %v1675_v11 = vpop.f32.mrb[20].mxu1 }
 0xe11   :  { %v1599_v12 = vpop.f32.mrb[10].mxu0  ;;  %v2833_v13 = vpop.f32.mrb[21].mxu1  ;;  %v1676_v33 = vadd.f32 %v3273_v52, %v1675_v11 }
 0xe12   :  { %v1600_v14 = vadd.f32 %v3267_v48, %v1599_v12  ;;  %v2828_v35 = vpop.f32.mrb[11].mxu0  ;;  %v2589_v12 = vld [vmem:[%s3632_s5 + $0x1] ss:$0 sm:$0xff] }
 0xe13   :  { %v1688_v16 = vsel %vm525_vm3, %v1676_v33, -inf }
 0xe14   :  { %v1685_v15 = vsel %vm525_vm3, %v1600_v14, -inf }
 0xe15   :  { %1686 = vmax.xlane.f32.xlu0 %v1685_v15 }
 0xe19   :  { %1689 = vmax.xlane.f32.xlu0 %v1688_v16 }
 0xe32   :  { %v1681_v17 = vpop.xlane.xlu0 %1680 }
 0xe33   :  { %v1691_v18 = vsub.f32 %v1448_v4, %v1681_v17 }
 0xe35   :  { %v1695_v19 = vmul.f32 1.442695, %v1691_v18 }
 0xe36   :  { %v1684_v20 = vpop.xlane.xlu1 %1683 }
 0xe37   :  { %3026 = vpow2.f32 %v1695_v19  ;;  %v1692_v21 = vsub.f32 %v1524_v8, %v1684_v20 }
 0xe39   :  { %v1697_v22 = vmul.f32 1.442695, %v1692_v21 }
 0xe3b   :  { %3028 = vpow2.f32 %v1697_v22 }
 0xe41   :  { %v3027_v23 = vpop.eup %3026 }
 0xe42   :  { %v1703_v48 = vsel %vm525_vm3, %v3027_v23, 0.0 }
 0xe43   :  { %1704 = vadd.xlane.f32.xlu0 %v1703_v48 }
 0xe45   :  { %v3029_v24 = vpop.eup %3028 }
 0xe46   :  { %v1706_v52 = vsel %vm525_vm3, %v3029_v24, 0.0 }
 0xe47   :  { %1707 = vadd.xlane.f32.xlu1 %v1706_v52 }
 0xea2   :  { %v1687_v25 = vpop.xlane.xlu0 %1686 }
 0xea3   :  { %v1693_v26 = vsub.f32 %v1600_v14, %v1687_v25 }
 0xea5   :  { %v1699_v27 = vmul.f32 1.442695, %v1693_v26  ;;  %v2597_v26 = vld [vmem:[%s3635_s8 + $0x28] sm:$0xff] }
 0xea6   :  { %v1690_v28 = vpop.xlane.xlu0 %1689 }
 0xea7   :  { %3030 = vpow2.f32 %v1699_v27  ;;  %v1694_v29 = vsub.f32 %v1676_v33, %v1690_v28  ;;  %v3082_v28 = vmov 0.0|0.0  }
 0xea9   :  { %v1701_v30 = vmul.f32 1.442695, %v1694_v29  ;;  %v2598_v29 = vld [vmem:[%s3635_s8 + $0x30] sm:$0xff] }
 0xeab   :  { %3032 = vpow2.f32 %v1701_v30  ;;  %v2599_v30 = vld [vmem:[%s3635_s8 + $0x38] sm:$0xff] }
 0xeb1   :  { %v3031_v31 = vpop.eup %3030 }
 0xeb2   :  { %v1709_v32 = vsel %vm525_vm3, %v3031_v31, 0.0 }
 0xeb3   :  { %1710 = vadd.xlane.f32.xlu0 %v1709_v32 }
 0xeb5   :  { %v3033_v34 = vpop.eup %3032 }
 0xeb6   :  { %v1712_v37 = vsel %vm525_vm3, %v3033_v34, 0.0 }
 0xeb7   :  { %1713 = vadd.xlane.f32.xlu1 %v1712_v37 }
 0xec8   :  { %1799 = vrot.lane.b32.xlu1 %v3421_v58, %s3080_s23  ;;  %v2584_v58 = vld [vmem:[%s3631_s4 + $0x20] sm:$0xff] }
 0xec9   :  { %1723 = vrot.lane.b32.xlu0 %v3423_v60, %s3080_s23  ;;  %v2954_v60 = vpack.c.bf16 %v2585_v59, %v2584_v58  ;;  %v2604_v58 = vld [vmem:[%s3637_s10 + $0x48] sm:$0xff] }
 0xecc   :  { %1875 = vrot.lane.b32.xlu1 %v3437_v62, %s3080_s23  ;;  %v2587_v62 = vld [vmem:[%s3631_s4 + $0x38] sm:$0xff] }
 0xed0   :  { %1951 = vrot.lane.b32.xlu1 %v3433_v61, %s3080_s23  ;;  %v1705_v38 = vpop.xlane.xlu0 %1704  ;;  %v2586_v61 = vld [vmem:[%s3631_s4 + $0x30] sm:$0xff] }
 0xed1   :  { %3034 = vrcp.f32 %v1705_v38  ;;  %v2958_v63 = vpack.c.bf16 %v2587_v62, %v2586_v61  ;;  %v2606_v61 = vld [vmem:[%s3637_s10 + $0x58] sm:$0xff]  ;;  %v2607_v62 = vld [vmem:[%s3637_s10 + $0x60] sm:$0xff] }
 0xed4   :  { %v1708_v39 = vpop.xlane.xlu1 %1707 }
 0xed5   :  { %3036 = vrcp.f32 %v1708_v39 }
 0xedb   :  { %v3035_v41 = vpop.eup %3034 }
 0xedc   :  { %v1719_v42 = vmul.f32 %v3035_v41, %v3027_v23 }
 0xedf   :  { %v3037_v45 = vpop.eup %3036 }
 0xee0   :  { %v1720_v46 = vmul.f32 %v3037_v45, %v3029_v24 }
 0xf40   :  { %v1711_v40 = vpop.xlane.xlu0 %1710 }
 0xf41   :  { %3038 = vrcp.f32 %v1711_v40 }
 0xf44   :  { %v1714_v43 = vpop.xlane.xlu1 %1713  ;;  %v1724_v44 = vpop.permute.xlu0 %1723 }
 0xf45   :  { %3040 = vrcp.f32 %v1714_v43  ;;  %2835 = vmatpush3.msra.mxu0 %v1724_v44  ;;  %v2595_v44 = vld [vmem:[%s3634_s7 + $0x1] ss:$0 sm:$0xff] }
 0xf46   :  { %2837 = vmatmul.mubr.msk.f32.vlgmr.msra.gmra.mrb[12].mxu0 %vm525_vm3, %v1719_v42  ;;  %2844 = vmatprep.subr.mxu0 %v3076_v36  ;;  %v2594_v42 = vld [vmem:[%s3633_s6 + $0x1] ss:$0 sm:$0xff] }
 0xf47   :  { %2846 = vmatprep.mubr.msk.f32.mxu0 %vm3077_vm1, %v3076_v36 }
 0xf48   :  { %v1800_v47 = vpop.permute.xlu1 %1799 }
 0xf49   :  { %2840 = vmatpush3.msra.mxu1 %v1800_v47 }
 0xf4a   :  { %2842 = vmatmul.mubr.msk.f32.vlgmr.msra.gmra.mrb[22].mxu1 %vm525_vm3, %v1720_v46  ;;  %2849 = vmatprep.subr.mxu1 %v3076_v36 }
 0xf4b   :  { %v3039_v49 = vpop.eup %3038  ;;  %2851 = vmatprep.mubr.msk.f32.mxu1 %vm3077_vm1, %v3076_v36 }
 0xf4c   :  { %v1721_v50 = vmul.f32 %v3039_v49, %v3031_v31  ;;  %v1876_v51 = vpop.permute.xlu1 %1875  ;;  %v2966_v31 = vpack.c.bf16 %v2599_v30, %v2598_v29 }
 0xf4d   :  { %2845 = vmatpush3.msra.mxu0 %v1876_v51 }
 0xf4e   :  { %2847 = vmatmul.mubr.msk.f32.vlgmr.msra.gmra.mrb[14].mxu0 %vm525_vm3, %v1721_v50  ;;  %2955 = vmatprep.subr.bf16.mxu0 %v2954_v60 }
 0xf4f   :  { %v3041_v53 = vpop.eup %3040  ;;  %2957 = vmatpush3.bf16.msra.mxu0 %v2954_v60  ;;  %v2605_v60 = vld [vmem:[%s3637_s10 + $0x50] sm:$0xff] }
 0xf50   :  { %v1722_v56 = vmul.f32 %v3041_v53, %v3033_v34  ;;  %v1952_v57 = vpop.permute.xlu1 %1951  ;;  %2959 = vmatprep.subr.bf16.mxu0 %v2958_v63 }
 0xf51   :  { %2850 = vmatpush3.msra.mxu1 %v1952_v57  ;;  %v2603_v57 = vld [vmem:[%s3637_s10 + $0x40] sm:$0xff] }
 0xf52   :  { %2852 = vmatmul.mubr.msk.f32.vlgmr.msra.gmra.mrb[24].mxu1 %vm525_vm3, %v1722_v56  ;;  %2962 = vmatprep.subr.bf16.mxu1 %v3082_v28  ;;  %v2969_v59 = vpack.c.bf16 %v2604_v58, %v2603_v57 }
 0xf53   :  { %2873 = vmatprep.mubr.msk.f32.mxu1 %vm3077_vm1, %v3076_v36  ;;  %2961 = vmatpush3.bf16.msra.mxu0 %v2958_v63  ;;  %v2608_v63 = vld [vmem:[%s3637_s10 + $0x68] sm:$0xff] }
 0xf54   :  { %2968 = vmatprep.subr.bf16.mxu0 %v3082_v28 }
0x1019   :  { %v1795_v0 = vpop.f32.mrb[12].mxu0 }
0x101a   :  { %v2838_v1 = vpop.f32.mrb[13].mxu0 }
0x101b   :  { %v2609_v1 = vld [vmem:[%s3637_s10 + $0x70] sm:$0xff] }
0x101d   :  { %v1871_v2 = vpop.f32.mrb[22].mxu1 }
0x101e   :  { %v2843_v3 = vpop.f32.mrb[23].mxu1 }
0x1021   :  { %v1947_v4 = vpop.f32.mrb[14].mxu0 }
0x1022   :  { %2029 = vrot.lane.b32.xlu0 %v1947_v4, %s3081_s19  ;;  %v2848_v5 = vpop.f32.mrb[15].mxu0  ;;  %v2601_v4 = vld [vmem:[%s3636_s9 + $0x1] ss:$0 sm:$0xff] }
0x1025   :  { %v2023_v6 = vpop.f32.mrb[24].mxu1 }
0x1026   :  { %2031 = vrot.lane.b32.xlu1 %v2023_v6, %s3081_s19  ;;  %v2853_v7 = vpop.f32.mrb[25].mxu1 }
0x1094   :  { %v2030_v8 = vpop.permute.xlu0 %2029 }
0x1095   :  { %v2035_v9 = vsel %vm222_vm2, %v1795_v0, %v2030_v8  ;;  %v2975_v0 = vpack.c.bf16 %v2608_v63, %v2607_v62 }
0x1096   :  { %2862 = vmatprep.mubr.msk.f32.mxu0 %vm78_vm0, %v2035_v9 }
0x1098   :  { %v2032_v10 = vpop.permute.xlu1 %2031 }
0x1099   :  { %v2036_v11 = vsel %vm222_vm2, %v1871_v2, %v2032_v10  ;;  %v2610_v2 = vld [vmem:[%s3637_s10 + $0x78] sm:$0xff] }
0x109a   :  { %2863 = vmatmul.mubr.msk.f32.vlgmr.msra.gmra.mrb[16].mxu0 %vm78_vm0, %v2036_v11  ;;  %v2978_v3 = vpack.c.bf16 %v2610_v2, %v2609_v1 }
0x109b   :  { %2892 = vmatprep.mubr.msk.f32.mxu0 %vm3077_vm1, %v3076_v36  ;;  %2970 = vmatpush3.bf16.msra.mxu0 %v2969_v59  ;;  %v2618_v59 = vld [vmem:[%s3644_s17] ss:$0 sm:$0xff] }
0x109c   :  { %2971 = vmatprep.subr.bf16.mxu0 %v3082_v28 }
0x116d   :  { %v2864_v13 = vpop.f32.mrb[16].mxu0 }
0x116e   :  { %v2128_v14 = vadd.f32 %v2864_v13, %v2589_v12  ;;  %v2122_v35 = vpop.f32.mrb[17].mxu0 }
0x116f   :  { %v2123_v33 = vadd.f32 %v2589_v12, %v2122_v35 }
0x1170   :  { %v2132_v15 = vadd.f32 %v2128_v14, %v3410_v55 }
0x1171   :  { %v2131_v16 = vadd.f32 %v2123_v33, %v3408_v54  ;;  %v2596_v54 = vld [vmem:[%s3635_s8 + $0x20] sm:$0xff] }
0x1172   :  { %v2140_v17 = vsel %vm78_vm0, %v2132_v15, 0.0  ;;  %v2963_v27 = vpack.c.bf16 %v2597_v26, %v2596_v54 }
0x1173   :  { %2141 = vadd.xlane.f32.xlu0 %v2140_v17  ;;  %v2137_v18 = vsel %vm78_vm0, %v2131_v16, 0.0 }
0x1174   :  { %2138 = vadd.xlane.f32.xlu1 %v2137_v18  ;;  %2964 = vmatpush3.bf16.msra.mxu1 %v2963_v27 }
0x1175   :  { %2965 = vmatprep.subr.bf16.mxu1 %v3082_v28 }
0x1178   :  { %2967 = vmatpush3.bf16.msra.mxu1 %v2966_v31 }
0x1179   :  { %2980 = vmatprep.subr.bf16.mxu1 %v3082_v28 }
0x1200   :  { %v2142_v19 = vpop.xlane.xlu0 %2141 }
0x1201   :  { %v2144_v20 = vmul.f32 0.03125, %v2142_v19  ;;  %v2139_v21 = vpop.xlane.xlu1 %2138 }
0x1202   :  { %v2143_v22 = vmul.f32 0.03125, %v2139_v21 }
0x1203   :  { %v2146_v23 = vsub.f32 %v2132_v15, %v2144_v20  ;;  %v2612_v15 = vld [vmem:[%s3638_s11 + $0x1] ss:$0 sm:$0xff] }
0x1204   :  { %v2145_v48 = vsub.f32 %v2131_v16, %v2143_v22 }
0x1205   :  { %v2148_v24 = vmul.f32 %v2146_v23, %v2146_v23 }
0x1206   :  { %v2147_v25 = vmul.f32 %v2145_v48, %v2145_v48 }
0x1207   :  { %v2152_v52 = vsel %vm78_vm0, %v2148_v24, 0.0 }
0x1208   :  { %2153 = vadd.xlane.f32.xlu0 %v2152_v52  ;;  %v2149_v55 = vsel %vm78_vm0, %v2147_v25, 0.0 }
0x120c   :  { %2150 = vadd.xlane.f32.xlu0 %v2149_v55 }
0x1295   :  { %v2154_v32 = vpop.xlane.xlu0 %2153 }
0x1296   :  { %v2156_v34 = vmul.f32 0.03125, %v2154_v32  ;;  %v2429_v32 = vld [vmem:[%s3643_s16] sm:$0xff] }
0x1298   :  { %v2158_v37 = vadd.f32 1e-12, %v2156_v34  ;;  %v2430_v34 = vld [vmem:[%s3643_s16 + $0x8] sm:$0xff] }
0x1299   :  { %v2151_v38 = vpop.xlane.xlu0 %2150 }
0x129a   :  { %3042 = vrsqrt.f32 %v2158_v37  ;;  %v2155_v39 = vmul.f32 0.03125, %v2151_v38  ;;  %v2981_v37 = vpack.c.bf16 %v2430_v34, %v2429_v32  ;;  %v2431_v38 = vld [vmem:[%s3643_s16 + $0x10] sm:$0xff] }
0x129c   :  { %v2157_v40 = vadd.f32 1e-12, %v2155_v39  ;;  %v2432_v39 = vld [vmem:[%s3643_s16 + $0x18] sm:$0xff] }
0x129e   :  { %3044 = vrsqrt.f32 %v2157_v40  ;;  %v2984_v40 = vpack.c.bf16 %v2432_v39, %v2431_v38 }
0x12a4   :  { %v3043_v41 = vpop.eup %3042 }
0x12a5   :  { %v2162_v43 = vmul.f32 %v3043_v41, %v2146_v23 }
0x12a7   :  { %v2170_v45 = vmul.f32 %v2594_v42, %v2162_v43 }
0x12a8   :  { %v3045_v46 = vpop.eup %3044 }
0x12a9   :  { %v2161_v47 = vmul.f32 %v3045_v46, %v2145_v48  ;;  %v2178_v49 = vadd.f32 %v2595_v44, %v2170_v45 }
0x12ab   :  { %v2169_v50 = vmul.f32 %v2594_v42, %v2161_v47  ;;  %v2194_v53 = vrot.slane %v2178_v49, 7  ;;  %v2616_v47 = vld [vmem:[%s3639_s12 + $0x1] ss:$0 sm:$0xff]  ;;  %s3083_s12 = smov [#allocation2]  }
0x12ac   :  { %s2524_s21 = sshll.u32 %s3083_s12, 4  ;;  %s2525_s21 = int_to_ptr.vmem [resolvable:$true] %s2524_s21 }
0x12ad   :  { %v2177_v51 = vadd.f32 %v2595_v44, %v2169_v50  ;;  %p3057_p1 = scmp.lt.s32.totalorder %s2525_s21, %s2525_s21 }
0x12af   :  { %v2196_v56 = vsel %vm2195_vm5, %v2194_v53, %v2177_v51  ;;  %v2617_v53 = vld [vmem:[%s3640_s13 + $0x1] ss:$0 sm:$0xff]  ;;  %s3052_s13 = scalar_lea.vmem %s2525_s21, 32 }
0x12b0   :  { %2874 = vmatmul.mubr.msk.f32.vlgmr.msra.gmra.mrb[26].mxu1 %vm78_vm0, %v2196_v56  ;;  %p3053_p0 = scmp.ne.s32.totalorder %s2525_s21, %s3052_s13  ;;  %p3058_p2 = scmp.lt.s32.totalorder %s3052_s13, %s3052_s13 }
0x12b1   :  { %2903 = vmatprep.mubr.msk.f32.mxu1 %vm3077_vm1, %v3076_v36  ;;  %v2972_v36 = vpack.c.bf16 %v2606_v61, %v2605_v60  ;;  %2982 = vmatpush3.bf16.msra.mxu1 %v2981_v37 }
0x12b2   :  { %2983 = vmatprep.subr.bf16.mxu1 %v3082_v28  ;;  %p3059_p3 = por %p3058_p2, %p3057_p1 }
0x12b3   :  { %2973 = vmatpush3.bf16.msra.mxu0 %v2972_v36 }
0x12b4   :  { %2974 = vmatprep.subr.bf16.mxu0 %v3082_v28  ;;  %p3060_p4 = pnand %p3059_p3, %p3053_p0 }
0x12b5   :  { %2985 = vmatpush3.bf16.msra.mxu1 %v2984_v40 }
0x12b7   :  { %2976 = vmatpush3.bf16.msra.mxu0 %v2975_v0 }
0x12b8   :  { %2977 = vmatprep.subr.bf16.mxu0 %v3082_v28 }
0x12bb   :  { %2979 = vmatpush3.bf16.msra.mxu0 %v2978_v3 }
0x1383   :  { %v2265_v5 = vpop.f32.mrb[26].mxu1 }
0x1384   :  { %v2266_v6 = vadd.f32 %v2601_v4, %v2265_v5  ;;  %v2875_v7 = vpop.f32.mrb[27].mxu1 }
0x1386   :  { %v2270_v8 = vmul.f32 0.044715, %v2266_v6  ;;  %v2269_v14 = vmul.f32 0.5, %v2266_v6 }
0x1388   :  { %v2271_v9 = vmul.f32 %v2270_v8, %v2266_v6 }
0x138a   :  { %v2272_v10 = vmul.f32 %v2271_v9, %v2266_v6 }
0x138c   :  { %v2273_v11 = vadd.f32 %v2272_v10, %v2266_v6 }
0x138e   :  { %v2274_v12 = vmul.f32 0.7978846, %v2273_v11 }
0x1390   :  { %3046 = vtanh.f32 %v2274_v12 }
0x139a   :  { %v3047_v13 = vpop.eup %3046 }
0x139b   :  { %v2276_v35 = vadd.f32 1.0, %v3047_v13 }
0x139d   :  { %v2277_v33 = vmul.f32 %v2276_v35, %v2269_v14 }
0x139f   :  { %2893 = vmatmul.mubr.msk.f32.vlgmr.msra.gmra.mrb[18].mxu0 %vm1147_vm4, %v2277_v33 }
0x1472   :  { %v2364_v16 = vpop.f32.mrb[18].mxu0 }
0x1473   :  { %v2365_v17 = vadd.f32 %v2612_v15, %v2364_v16  ;;  %v2894_v18 = vpop.f32.mrb[19].mxu0 }
0x1475   :  { %v2369_v19 = vrot.slane %v2365_v17, 1  ;;  %v2372_v21 = vadd.f32 %v2365_v17, %v2177_v51 }
0x1477   :  { %v2373_v20 = vadd.f32 %v2369_v19, %v2178_v49 }
0x1479   :  { %v2380_v22 = vrot.slane %v2373_v20, 7 }
0x147b   :  { %v2381_v23 = vsel %vm2195_vm5, %v2380_v22, %v2372_v21 }
0x147c   :  { %v2384_v48 = vsel %vm2383_vm6, %v2381_v23, 0.0 }
0x147d   :  { %2385 = vadd.xlane.f32.xlu0 %v2384_v48 }
0x150a   :  { %v2386_v24 = vpop.xlane.xlu0 %2385 }
0x150b   :  { %v2387_v52 = vmul.f32 0.03125, %v2386_v24 }
0x150d   :  { %v2389_v25 = vrot.slane %v2387_v52, 1  ;;  %v2392_v55 = vsub.f32 %v2372_v21, %v2387_v52 }
0x150f   :  { %v2393_v54 = vsub.f32 %v2373_v20, %v2389_v25  ;;  %v2394_v27 = vmul.f32 %v2392_v55, %v2392_v55 }
0x1511   :  { %v2395_v26 = vmul.f32 %v2393_v54, %v2393_v54 }
0x1513   :  { %v2398_v29 = vrot.slane %v2395_v26, 7 }
0x1515   :  { %v2399_v30 = vsel %vm2195_vm5, %v2398_v29, %v2394_v27 }
0x1516   :  { %v2401_v31 = vsel %vm2383_vm6, %v2399_v30, 0.0 }
0x1517   :  { %2402 = vadd.xlane.f32.xlu1 %v2401_v31 }
0x15a4   :  { %v2403_v41 = vpop.xlane.xlu1 %2402 }
0x15a5   :  { %v2404_v42 = vmul.f32 0.03125, %v2403_v41 }
0x15a7   :  { %v2405_v43 = vadd.f32 1e-12, %v2404_v42 }
0x15a9   :  { %3048 = vrsqrt.f32 %v2405_v43 }
0x15b3   :  { %v3049_v44 = vpop.eup %3048 }
0x15b4   :  { %v2408_v45 = vrot.slane %v3049_v44, 1  ;;  %v2411_v46 = vmul.f32 %v3049_v44, %v2392_v55 }
0x15b6   :  { %v2412_v49 = vmul.f32 %v2408_v45, %v2393_v54  ;;  %v2419_v50 = vmul.f32 %v2616_v47, %v2411_v46 }
0x15b8   :  { %v2420_v51 = vmul.f32 %v2616_v47, %v2412_v49  ;;  %v2427_v56 = vadd.f32 %v2617_v53, %v2419_v50 }
0x15ba   :  { %v2428_v28 = vadd.f32 %v2617_v53, %v2420_v51 }
0x15bc   :  { %v2442_v57 = vrot.slane %v2428_v28, 7 }
0x15be   :  { %v2443_v58 = vsel %vm2195_vm5, %v2442_v57, %v2427_v56 }
0x15bf   :  { %2904 = vmatmul.mubr.msk.f32.vlgmr.msra.gmra.mrb[28].mxu1 %vm78_vm0, %v2443_v58 }
0x1692   :  { %v2512_v60 = vpop.f32.mrb[28].mxu1 }
0x1693   :  { %v2513_v61 = vadd.f32 %v2618_v59, %v2512_v60  ;;  %v2905_v36 = vpop.f32.mrb[29].mxu1 }
0x1695   :  { %3050 = vtanh.f32 %v2513_v61 }
0x169f   :  { %v3051_v62 = vpop.eup %3050 }
0x16a0   :  { %2517 = vst.msk [vmem:[#allocation2] sm:$0x3] %vm2383_vm6, %v3051_v62 }
0x16a1   :  { %3063 = shalt.err (!%p3060_p4)
}
0x16a2   :  { %s3064_s17 = scalar_lea.hbm %s3645_s18, 32 }
0x16a3   :  { %p3065_p5 = scmp.ne.s32.totalorder %s3645_s18, %s3064_s17  ;;  %p3068_p6 = scmp.lt.u32.totalorder %s3064_s17, %s3645_s18 }
0x16a5   :  { %p3070_p7 = pnand %p3068_p6, %p3065_p5 }
0x16a7   :  { %3073 = shalt.err (!%p3070_p7)
}
0x16a8   :  { %2527 = dma.vmem_to_hbm [thread:$0]  %s2525_s21, 32, %s3645_s18, [#allocation3]  }
0x16a9   :  { %3074 = dma.done.wait [#allocation3], 32  }
0x16aa   :  { %3075 = vsyncadd [#allocation3], 4294967264 }
0x16ab   :  { %2531 = vsyncpa [#allocation3], 1 }

</bundles_post_ra>
